<compile_context>
chip_gen: v7x
topology: tpu7x:2x2x1
jax: 0.10.0
libtpu: 0.0.40
codegen_flags: <defaults>
</compile_context>

<pallas_src>
import jax
import jax.numpy as jnp
import numpy as np
from jax.experimental import pallas as pl
from jax.experimental.pallas import tpu as pltpu

EPS = 1e-5  # torch.nn.InstanceNorm1d default eps
_HI = jax.lax.Precision.HIGHEST


def _round_up(x, m):
    return (x + m - 1) // m * m


def _largest_divisor_leq(n, cap):
    cap = max(1, min(n, cap))
    for d in range(cap, 0, -1):
        if n % d == 0:
            return d
    return 1


def _pick_block(N, Cp, Lp):
    """Pick samples-per-grid-step (bn) and a VMEM limit from the device capacity."""
    try:
        cap = int(pltpu.get_tpu_info().vmem_capacity_bytes)
    except Exception:
        cap = 64 << 20  # conservative fallback (v7x per-core VMEM)
    vmem_limit = int(min(cap * 3 // 4, 96 << 20))  # 48MiB on 64MiB parts, 96MiB on 128MiB
    # ~14 live (Cp, Lp)-sized f32 temporaries per sample (incl. I/O double-buffering).
    per_sample = 14 * Cp * Lp * 4
    step_budget = (6 << 20) if cap <= (64 << 20) else (16 << 20)
    max_bn = max(1, step_budget // per_sample)
    # Keep at least 2 grid steps when N >= 2 so "parallel" can shard across v7x's 2 TCs.
    max_bn = min(max_bn, max(1, N // 2))
    return _largest_divisor_leq(N, max_bn), vmem_limit


def _make_kernel(bn, c_pad, l_valid, l_pad, matmul_dtype):
    """Kernel closed over static sizes.  Processes a (Cp, bn*Lp) slab per grid step."""
    W = bn * l_pad
    inv_L = 1.0 / float(l_valid)
    full = l_valid == l_pad
    del c_pad  # only needed by the wrapper

    def kernel(x_ref, w1_ref, w2_ref, lm_ref, ssum_ref, sbc_ref, o_ref):
        xf = x_ref[...].astype(jnp.float32)          # (Cp, W)
        lm = lm_ref[...]                             # (1, W) int32: position within each Lp segment
        is_left = lm == 0
        is_right = lm == (l_valid - 1)
        if bn > 1:
            ssum = ssum_ref[...]                     # (W, bn8): 1 on valid lanes of segment b
            sbc = sbc_ref[...]                       # (bn8, W): 1 on lanes of segment b
        else:
            valid = lm < l_valid                     # (1, W)

        def conv_instance_norm(h, w_ref):
            # h: (Cp, W) f32; w_ref: (3, Cp, Cp) tap-major conv weights.
            hc = h if matmul_dtype is None else h.astype(matmul_dtype)
            # Cyclic shifts on the XLU (non-negative shifts only).
            h_m1 = pltpu.roll(hc, shift=1, axis=1)       # [:, l] = hc[:, l-1]
            h_p1 = pltpu.roll(hc, shift=W - 1, axis=1)   # [:, l] = hc[:, l+1]
            # ReflectionPad1d(1): per sample, col 0 reads col 1 and col L-1 reads col L-2.
            left = jnp.where(is_left, h_p1, h_m1)
            right = jnp.where(is_right, h_m1, h_p1)
            # Three tap matmuls accumulated directly (no (3Cp, W) concat).
            acc = (jnp.dot(w_ref[0], left, preferred_element_type=jnp.float32, precision=_HI)
                   + jnp.dot(w_ref[1], hc, preferred_element_type=jnp.float32, precision=_HI)
                   + jnp.dot(w_ref[2], right, preferred_element_type=jnp.float32, precision=_HI))
            # InstanceNorm1d(affine=False), two-pass, stats over the L valid lanes only.
            if bn > 1:
                mean = jnp.dot(acc, ssum, preferred_element_type=jnp.float32,
                               precision=_HI) * inv_L                          # (Cp, bn8)
                mean_b = jnp.dot(mean, sbc, preferred_element_type=jnp.float32,
                                 precision=_HI)                                 # (Cp, W)
                diff = acc - mean_b
                var = jnp.dot(diff * diff, ssum, preferred_element_type=jnp.float32,
                              precision=_HI) * inv_L                            # (Cp, bn8)
                inv_std = jax.lax.rsqrt(var + EPS)
                inv_b = jnp.dot(inv_std, sbc, preferred_element_type=jnp.float32,
                                precision=_HI)                                  # (Cp, W)
                return diff * inv_b
            else:
                accm = acc if full else jnp.where(valid, acc, 0.0)
                mean = jnp.sum(accm, axis=1, keepdims=True) * inv_L             # (Cp, 1)
                diff = acc - mean
                dm = diff if full else jnp.where(valid, diff, 0.0)
                var = jnp.sum(dm * dm, axis=1, keepdims=True) * inv_L
                return diff * jax.lax.rsqrt(var + EPS)

        h = conv_instance_norm(xf, w1_ref)
        h = jnp.maximum(h, 0.0)                      # ReLU
        h = conv_instance_norm(h, w2_ref)
        o_ref[...] = (xf + h).astype(o_ref.dtype)    # residual

    return kernel


def resnet_block(x, w1, b1, w2, b2, *, matmul_dtype=None):
    """ResnetBlock forward.

    x: (N, C, L); w1/w2: (C, C, 3) PyTorch Conv1d weights; b1/b2: (C,) biases.
    Biases are accepted for API parity but unused: a per-channel bias is cancelled
    exactly by the affine-free InstanceNorm that follows each conv.
    matmul_dtype=jnp.bfloat16 is recommended on v6e/v7x (norm/ReLU/residual stay f32).
    """
    del b1, b2  # exact no-op before InstanceNorm(affine=False)
    N, C, L = x.shape
    assert L >= 2, "ReflectionPad1d(1) requires L >= 2"

    c_align = 8 if matmul_dtype is None else 16   # bf16 sublane packing wants 16
    Cp = _round_up(C, c_align)
    Lp = _round_up(L, 128)

    bn, vmem_limit = _pick_block(N, Cp, Lp)
    W = bn * Lp
    bn8 = _round_up(bn, 8)  # pad the indicator matmul dims to a friendly size

    # Lane-dense batched layout: (Cp, N*Lp), padded channels/lanes are zero (inert).
    xp = jnp.pad(x, ((0, 0), (0, Cp - C), (0, Lp - L)))          # (N, Cp, Lp)
    x2 = jnp.transpose(xp, (1, 0, 2)).reshape(Cp, N * Lp)        # (Cp, N*Lp)

    def stack_w(w):
        wp = jnp.pad(w, ((0, Cp - C), (0, Cp - C), (0, 0)))      # (Cp, Cp, 3)
        ws = jnp.transpose(wp, (2, 0, 1))                        # (3, Cp, Cp) tap-major
        if matmul_dtype is not None:
            ws = ws.astype(matmul_dtype)
        return ws

    w1s, w2s = stack_w(w1), stack_w(w2)

    # Per-block auxiliary constants (built once on host; tiny).
    pos = np.arange(W) % Lp
    seg = np.arange(W) // Lp
    lane_mod = jnp.asarray(pos[None, :], dtype=jnp.int32)                            # (1, W)
    ssum = jnp.asarray(((pos < L)[:, None]
                        & (seg[:, None] == np.arange(bn8)[None, :])).astype(np.float32))  # (W, bn8)
    sbc = jnp.asarray((seg[None, :] == np.arange(bn8)[:, None]).astype(np.float32))       # (bn8, W)

    kernel = _make_kernel(bn, Cp, L, Lp, matmul_dtype)

    out2 = pl.pallas_call(
        kernel,
        out_shape=jax.ShapeDtypeStruct((Cp, N * Lp), x.dtype),
        grid=(N // bn,),
        in_specs=[
            pl.BlockSpec((Cp, W), lambda i: (0, i)),           # x slab
            pl.BlockSpec((3, Cp, Cp), lambda i: (0, 0, 0)),    # conv1 weights
            pl.BlockSpec((3, Cp, Cp), lambda i: (0, 0, 0)),    # conv2 weights
            pl.BlockSpec((1, W), lambda i: (0, 0)),            # lane position within segment
            pl.BlockSpec((W, bn8), lambda i: (0, 0)),          # valid-lane one-hot (stats)
            pl.BlockSpec((bn8, W), lambda i: (0, 0)),          # segment broadcast-back
        ],
        out_specs=pl.BlockSpec((Cp, W), lambda i: (0, i)),
        compiler_params=pltpu.CompilerParams(
            dimension_semantics=("parallel",),
            vmem_limit_bytes=vmem_limit,
        ),
    )(x2, w1s, w2s, lane_mod, ssum, sbc)

    out = out2.reshape(Cp, N, Lp).transpose(1, 0, 2)
    return out[:, :C, :L]
    # TODO(synk): for very large C*L, tile L (last grid axis, "arbitrary") with a
    # 1-column halo and carry per-channel (sum, sumsq) partials across L-tiles;
    # needed to fit v7x's 64 MiB VMEM for e.g. C=512, L>=8k.


def resnet_block_ref(x, w1, b1, w2, b2):
    """Pure-JAX reference of the PyTorch forward (biases included), for verification."""

    def conv_in(h, w, b):
        N, C, L = h.shape
        hp = jnp.concatenate([h[:, :, 1:2], h, h[:, :, L - 2:L - 1]], axis=2)
        out = jnp.zeros((N, C, L), jnp.float32)
        for k in range(3):
            out = out + jnp.einsum('oc,ncl->nol', w[:, :, k], hp[:, :, k:k + L],
                                   precision=_HI)
        out = out + b[None, :, None]
        mean = jnp.mean(out, axis=2, keepdims=True)
        var = jnp.mean((out - mean) ** 2, axis=2, keepdims=True)
        return (out - mean) / jnp.sqrt(var + EPS)

    h = conv_in(x, w1, b1)
    h = jnp.maximum(h, 0.0)
    h = conv_in(h, w2, b2)
    return x + h


if __name__ == "__main__":
    key = jax.random.PRNGKey(0)
    kx, kw1, kb1, kw2, kb2 = jax.random.split(key, 5)

    # Case 1: batched path (bn=2 samples per grid step, 2 grid steps).
    N, C, L = 4, 4, 16
    x = jax.random.normal(kx, (N, C, L), dtype=jnp.float32)
    w1 = 0.1 * jax.random.normal(kw1, (C, C, 3), dtype=jnp.float32)
    b1 = 0.1 * jax.random.normal(kb1, (C,), dtype=jnp.float32)
    w2 = 0.1 * jax.random.normal(kw2, (C, C, 3), dtype=jnp.float32)
    b2 = 0.1 * jax.random.normal(kb2, (C,), dtype=jnp.float32)

    ref = jax.block_until_ready(resnet_block_ref(x, w1, b1, w2, b2))
    out = jax.block_until_ready(resnet_block(x, w1, b1, w2, b2))
    np.testing.assert_allclose(np.asarray(out), np.asarray(ref), rtol=1e-4, atol=1e-4)

    # bf16 MXU path (v6e/v7x): only conv operands are bf16; norm/ReLU/residual stay f32.
    out_bf16 = jax.block_until_ready(
        resnet_block(x, w1, b1, w2, b2, matmul_dtype=jnp.bfloat16))
    np.testing.assert_allclose(np.asarray(out_bf16), np.asarray(ref), rtol=1e-1, atol=1e-1)

    # Case 2: single-sample-per-step path with unaligned C / L (padding + mask coverage).
    N2, C2, L2 = 2, 5, 10
    x_b = jax.random.normal(kx, (N2, C2, L2), dtype=jnp.float32)
    w1b = 0.1 * jax.random.normal(kw1, (C2, C2, 3), dtype=jnp.float32)
    b1b = 0.1 * jax.random.normal(kb1, (C2,), dtype=jnp.float32)
    w2b = 0.1 * jax.random.normal(kw2, (C2, C2, 3), dtype=jnp.float32)
    b2b = 0.1 * jax.random.normal(kb2, (C2,), dtype=jnp.float32)
    ref2 = jax.block_until_ready(resnet_block_ref(x_b, w1b, b1b, w2b, b2b))
    out2 = jax.block_until_ready(resnet_block(x_b, w1b, b1b, w2b, b2b))
    np.testing.assert_allclose(np.asarray(out2), np.asarray(ref2), rtol=1e-4, atol=1e-4)

    print("KERNEL_OK")
</pallas_src>

<mosaic_0001>
module attributes {stable_mosaic.version = 11 : i64} {
  func.func @kernel(%arg0: i32, %arg1: memref<8x256xf32, #tpu.memory_space<vmem>>, %arg2: memref<3x8x8xf32, #tpu.memory_space<vmem>>, %arg3: memref<3x8x8xf32, #tpu.memory_space<vmem>>, %arg4: memref<1x256xi32, #tpu.memory_space<vmem>>, %arg5: memref<256x8xf32, #tpu.memory_space<vmem>>, %arg6: memref<8x256xf32, #tpu.memory_space<vmem>>, %arg7: memref<8x256xf32, #tpu.memory_space<vmem>>) attributes {dimension_semantics = [#tpu.dimension_semantics<parallel>], iteration_bounds = array<i64: 2>, scalar_prefetch = 0 : i64, scratch_operands = 0 : i64, tpu.core_type = #tpu.core_type<tc>, window_params = [{transform_indices = @transform_0, window_bounds = array<i64: 8, 256>}, {pipeline_mode = #tpu.pipeline_mode<synchronous>, transform_indices = @transform_1, window_bounds = array<i64: 3, 8, 8>}, {pipeline_mode = #tpu.pipeline_mode<synchronous>, transform_indices = @transform_2, window_bounds = array<i64: 3, 8, 8>}, {pipeline_mode = #tpu.pipeline_mode<synchronous>, transform_indices = @transform_3, window_bounds = array<i64: 1, 256>}, {pipeline_mode = #tpu.pipeline_mode<synchronous>, transform_indices = @transform_4, window_bounds = array<i64: 256, 8>}, {pipeline_mode = #tpu.pipeline_mode<synchronous>, transform_indices = @transform_5, window_bounds = array<i64: 8, 256>}, {transform_indices = @transform_6, window_bounds = array<i64: 8, 256>}]} {
    %c0 = arith.constant 0 : index
    %c0_0 = arith.constant 0 : index
    %0 = vector.load %arg1[%c0, %c0_0] : memref<8x256xf32, #tpu.memory_space<vmem>>, vector<8x256xf32>
    %c0_1 = arith.constant 0 : index
    %c0_2 = arith.constant 0 : index
    %1 = vector.load %arg4[%c0_1, %c0_2] : memref<1x256xi32, #tpu.memory_space<vmem>>, vector<1x256xi32>
    %c0_i32 = arith.constant 0 : i32
    %2 = vector.broadcast %c0_i32 : i32 to vector<1x256xi32>
    %3 = arith.cmpi eq, %1, %2 : vector<1x256xi32>
    %c15_i32 = arith.constant 15 : i32
    %4 = vector.broadcast %c15_i32 : i32 to vector<1x256xi32>
    %5 = arith.cmpi eq, %1, %4 : vector<1x256xi32>
    %c0_3 = arith.constant 0 : index
    %c0_4 = arith.constant 0 : index
    %6 = vector.load %arg5[%c0_3, %c0_4] : memref<256x8xf32, #tpu.memory_space<vmem>>, vector<256x8xf32>
    %c0_5 = arith.constant 0 : index
    %c0_6 = arith.constant 0 : index
    %7 = vector.load %arg6[%c0_5, %c0_6] : memref<8x256xf32, #tpu.memory_space<vmem>>, vector<8x256xf32>
    %c1_i32 = arith.constant 1 : i32
    %8 = tpu.dynamic_rotate %0 by %c1_i32 dim 1 : vector<8x256xf32>, i32 -> vector<8x256xf32>
    %c255_i32 = arith.constant 255 : i32
    %9 = tpu.dynamic_rotate %0 by %c255_i32 dim 1 : vector<8x256xf32>, i32 -> vector<8x256xf32>
    %10 = vector.shape_cast %3 : vector<1x256xi1> to vector<1x256xi1>
    %11 = vector.broadcast %10 : vector<1x256xi1> to vector<8x256xi1>
    %12 = arith.select %11, %9, %8 : vector<8x256xi1>, vector<8x256xf32>
    %13 = vector.shape_cast %5 : vector<1x256xi1> to vector<1x256xi1>
    %14 = vector.broadcast %13 : vector<1x256xi1> to vector<8x256xi1>
    %15 = arith.select %14, %8, %9 : vector<8x256xi1>, vector<8x256xf32>
    %c0_7 = arith.constant 0 : index
    %c0_8 = arith.constant 0 : index
    %c0_9 = arith.constant 0 : index
    %16 = vector.load %arg2[%c0_7, %c0_8, %c0_9] : memref<3x8x8xf32, #tpu.memory_space<vmem>>, vector<1x8x8xf32>
    %17 = vector.shape_cast %16 : vector<1x8x8xf32> to vector<8x8xf32>
    %cst = arith.constant dense<0.000000e+00> : vector<8x256xf32>
    %18 = tpu.matmul %17, %12, %cst {dimension_numbers = #tpu.dot_dimension_numbers<[1], [0], [0], [1], [0, 0, 1, 1], [], []>, precision = #tpu.contract_precision<fp32>} : vector<8x8xf32>, vector<8x256xf32>, vector<8x256xf32> -> vector<8x256xf32>
    %c1 = arith.constant 1 : index
    %c0_10 = arith.constant 0 : index
    %c0_11 = arith.constant 0 : index
    %19 = vector.load %arg2[%c1, %c0_10, %c0_11] : memref<3x8x8xf32, #tpu.memory_space<vmem>>, vector<1x8x8xf32>
    %20 = vector.shape_cast %19 : vector<1x8x8xf32> to vector<8x8xf32>
    %cst_12 = arith.constant dense<0.000000e+00> : vector<8x256xf32>
    %21 = tpu.matmul %20, %0, %cst_12 {dimension_numbers = #tpu.dot_dimension_numbers<[1], [0], [0], [1], [0, 0, 1, 1], [], []>, precision = #tpu.contract_precision<fp32>} : vector<8x8xf32>, vector<8x256xf32>, vector<8x256xf32> -> vector<8x256xf32>
    %22 = arith.addf %18, %21 : vector<8x256xf32>
    %c2 = arith.constant 2 : index
    %c0_13 = arith.constant 0 : index
    %c0_14 = arith.constant 0 : index
    %23 = vector.load %arg2[%c2, %c0_13, %c0_14] : memref<3x8x8xf32, #tpu.memory_space<vmem>>, vector<1x8x8xf32>
    %24 = vector.shape_cast %23 : vector<1x8x8xf32> to vector<8x8xf32>
    %cst_15 = arith.constant dense<0.000000e+00> : vector<8x256xf32>
    %25 = tpu.matmul %24, %15, %cst_15 {dimension_numbers = #tpu.dot_dimension_numbers<[1], [0], [0], [1], [0, 0, 1, 1], [], []>, precision = #tpu.contract_precision<fp32>} : vector<8x8xf32>, vector<8x256xf32>, vector<8x256xf32> -> vector<8x256xf32>
    %26 = arith.addf %22, %25 : vector<8x256xf32>
    %cst_16 = arith.constant dense<0.000000e+00> : vector<8x8xf32>
    %27 = tpu.matmul %26, %6, %cst_16 {dimension_numbers = #tpu.dot_dimension_numbers<[1], [0], [0], [1], [0, 0, 1, 1], [], []>, precision = #tpu.contract_precision<fp32>} : vector<8x256xf32>, vector<256x8xf32>, vector<8x8xf32> -> vector<8x8xf32>
    %cst_17 = arith.constant 6.250000e-02 : f32
    %28 = vector.broadcast %cst_17 : f32 to vector<8x8xf32>
    %29 = arith.mulf %27, %28 : vector<8x8xf32>
    %cst_18 = arith.constant dense<0.000000e+00> : vector<8x256xf32>
    %30 = tpu.matmul %29, %7, %cst_18 {dimension_numbers = #tpu.dot_dimension_numbers<[1], [0], [0], [1], [0, 0, 1, 1], [], []>, precision = #tpu.contract_precision<fp32>} : vector<8x8xf32>, vector<8x256xf32>, vector<8x256xf32> -> vector<8x256xf32>
    %31 = arith.subf %26, %30 : vector<8x256xf32>
    %32 = arith.mulf %31, %31 : vector<8x256xf32>
    %cst_19 = arith.constant dense<0.000000e+00> : vector<8x8xf32>
    %33 = tpu.matmul %32, %6, %cst_19 {dimension_numbers = #tpu.dot_dimension_numbers<[1], [0], [0], [1], [0, 0, 1, 1], [], []>, precision = #tpu.contract_precision<fp32>} : vector<8x256xf32>, vector<256x8xf32>, vector<8x8xf32> -> vector<8x8xf32>
    %cst_20 = arith.constant 6.250000e-02 : f32
    %34 = vector.broadcast %cst_20 : f32 to vector<8x8xf32>
    %35 = arith.mulf %33, %34 : vector<8x8xf32>
    %cst_21 = arith.constant 9.99999974E-6 : f32
    %36 = vector.broadcast %cst_21 : f32 to vector<8x8xf32>
    %37 = arith.addf %35, %36 : vector<8x8xf32>
    %38 = math.rsqrt %37 : vector<8x8xf32>
    %cst_22 = arith.constant dense<0.000000e+00> : vector<8x256xf32>
    %39 = tpu.matmul %38, %7, %cst_22 {dimension_numbers = #tpu.dot_dimension_numbers<[1], [0], [0], [1], [0, 0, 1, 1], [], []>, precision = #tpu.contract_precision<fp32>} : vector<8x8xf32>, vector<8x256xf32>, vector<8x256xf32> -> vector<8x256xf32>
    %40 = arith.mulf %31, %39 : vector<8x256xf32>
    %cst_23 = arith.constant 0.000000e+00 : f32
    %41 = vector.broadcast %cst_23 : f32 to vector<8x256xf32>
    %42 = arith.maximumf %40, %41 : vector<8x256xf32>
    %c1_i32_24 = arith.constant 1 : i32
    %43 = tpu.dynamic_rotate %42 by %c1_i32_24 dim 1 : vector<8x256xf32>, i32 -> vector<8x256xf32>
    %c255_i32_25 = arith.constant 255 : i32
    %44 = tpu.dynamic_rotate %42 by %c255_i32_25 dim 1 : vector<8x256xf32>, i32 -> vector<8x256xf32>
    %45 = vector.shape_cast %3 : vector<1x256xi1> to vector<1x256xi1>
    %46 = vector.broadcast %45 : vector<1x256xi1> to vector<8x256xi1>
    %47 = arith.select %46, %44, %43 : vector<8x256xi1>, vector<8x256xf32>
    %48 = vector.shape_cast %5 : vector<1x256xi1> to vector<1x256xi1>
    %49 = vector.broadcast %48 : vector<1x256xi1> to vector<8x256xi1>
    %50 = arith.select %49, %43, %44 : vector<8x256xi1>, vector<8x256xf32>
    %c0_26 = arith.constant 0 : index
    %c0_27 = arith.constant 0 : index
    %c0_28 = arith.constant 0 : index
    %51 = vector.load %arg3[%c0_26, %c0_27, %c0_28] : memref<3x8x8xf32, #tpu.memory_space<vmem>>, vector<1x8x8xf32>
    %52 = vector.shape_cast %51 : vector<1x8x8xf32> to vector<8x8xf32>
    %cst_29 = arith.constant dense<0.000000e+00> : vector<8x256xf32>
    %53 = tpu.matmul %52, %47, %cst_29 {dimension_numbers = #tpu.dot_dimension_numbers<[1], [0], [0], [1], [0, 0, 1, 1], [], []>, precision = #tpu.contract_precision<fp32>} : vector<8x8xf32>, vector<8x256xf32>, vector<8x256xf32> -> vector<8x256xf32>
    %c1_30 = arith.constant 1 : index
    %c0_31 = arith.constant 0 : index
    %c0_32 = arith.constant 0 : index
    %54 = vector.load %arg3[%c1_30, %c0_31, %c0_32] : memref<3x8x8xf32, #tpu.memory_space<vmem>>, vector<1x8x8xf32>
    %55 = vector.shape_cast %54 : vector<1x8x8xf32> to vector<8x8xf32>
    %cst_33 = arith.constant dense<0.000000e+00> : vector<8x256xf32>
    %56 = tpu.matmul %55, %42, %cst_33 {dimension_numbers = #tpu.dot_dimension_numbers<[1], [0], [0], [1], [0, 0, 1, 1], [], []>, precision = #tpu.contract_precision<fp32>} : vector<8x8xf32>, vector<8x256xf32>, vector<8x256xf32> -> vector<8x256xf32>
    %57 = arith.addf %53, %56 : vector<8x256xf32>
    %c2_34 = arith.constant 2 : index
    %c0_35 = arith.constant 0 : index
    %c0_36 = arith.constant 0 : index
    %58 = vector.load %arg3[%c2_34, %c0_35, %c0_36] : memref<3x8x8xf32, #tpu.memory_space<vmem>>, vector<1x8x8xf32>
    %59 = vector.shape_cast %58 : vector<1x8x8xf32> to vector<8x8xf32>
    %cst_37 = arith.constant dense<0.000000e+00> : vector<8x256xf32>
    %60 = tpu.matmul %59, %50, %cst_37 {dimension_numbers = #tpu.dot_dimension_numbers<[1], [0], [0], [1], [0, 0, 1, 1], [], []>, precision = #tpu.contract_precision<fp32>} : vector<8x8xf32>, vector<8x256xf32>, vector<8x256xf32> -> vector<8x256xf32>
    %61 = arith.addf %57, %60 : vector<8x256xf32>
    %cst_38 = arith.constant dense<0.000000e+00> : vector<8x8xf32>
    %62 = tpu.matmul %61, %6, %cst_38 {dimension_numbers = #tpu.dot_dimension_numbers<[1], [0], [0], [1], [0, 0, 1, 1], [], []>, precision = #tpu.contract_precision<fp32>} : vector<8x256xf32>, vector<256x8xf32>, vector<8x8xf32> -> vector<8x8xf32>
    %cst_39 = arith.constant 6.250000e-02 : f32
    %63 = vector.broadcast %cst_39 : f32 to vector<8x8xf32>
    %64 = arith.mulf %62, %63 : vector<8x8xf32>
    %cst_40 = arith.constant dense<0.000000e+00> : vector<8x256xf32>
    %65 = tpu.matmul %64, %7, %cst_40 {dimension_numbers = #tpu.dot_dimension_numbers<[1], [0], [0], [1], [0, 0, 1, 1], [], []>, precision = #tpu.contract_precision<fp32>} : vector<8x8xf32>, vector<8x256xf32>, vector<8x256xf32> -> vector<8x256xf32>
    %66 = arith.subf %61, %65 : vector<8x256xf32>
    %67 = arith.mulf %66, %66 : vector<8x256xf32>
    %cst_41 = arith.constant dense<0.000000e+00> : vector<8x8xf32>
    %68 = tpu.matmul %67, %6, %cst_41 {dimension_numbers = #tpu.dot_dimension_numbers<[1], [0], [0], [1], [0, 0, 1, 1], [], []>, precision = #tpu.contract_precision<fp32>} : vector<8x256xf32>, vector<256x8xf32>, vector<8x8xf32> -> vector<8x8xf32>
    %cst_42 = arith.constant 6.250000e-02 : f32
    %69 = vector.broadcast %cst_42 : f32 to vector<8x8xf32>
    %70 = arith.mulf %68, %69 : vector<8x8xf32>
    %cst_43 = arith.constant 9.99999974E-6 : f32
    %71 = vector.broadcast %cst_43 : f32 to vector<8x8xf32>
    %72 = arith.addf %70, %71 : vector<8x8xf32>
    %73 = math.rsqrt %72 : vector<8x8xf32>
    %cst_44 = arith.constant dense<0.000000e+00> : vector<8x256xf32>
    %74 = tpu.matmul %73, %7, %cst_44 {dimension_numbers = #tpu.dot_dimension_numbers<[1], [0], [0], [1], [0, 0, 1, 1], [], []>, precision = #tpu.contract_precision<fp32>} : vector<8x8xf32>, vector<8x256xf32>, vector<8x256xf32> -> vector<8x256xf32>
    %75 = arith.mulf %66, %74 : vector<8x256xf32>
    %76 = arith.addf %0, %75 : vector<8x256xf32>
    %c0_45 = arith.constant 0 : index
    %c0_46 = arith.constant 0 : index
    %77 = vector.load %arg7[%c0_45, %c0_46] : memref<8x256xf32, #tpu.memory_space<vmem>>, vector<8x256xf32>
    tpu.vector_store %arg7[%c0_45, %c0_46], %76 {strides = array<i32>} : memref<8x256xf32, #tpu.memory_space<vmem>>, vector<8x256xf32>,
    return
  }
  func.func @transform_0(%arg0: i32) -> (i32, i32) {
    %c0_i32 = arith.constant 0 : i32
    %c0_i32_0 = arith.constant 0 : i32
    return %c0_i32, %arg0 : i32, i32
  }
  func.func @transform_1(%arg0: i32) -> (i32, i32, i32) {
    %c0_i32 = arith.constant 0 : i32
    %c0_i32_0 = arith.constant 0 : i32
    %c0_i32_1 = arith.constant 0 : i32
    %c0_i32_2 = arith.constant 0 : i32
    return %c0_i32, %c0_i32_0, %c0_i32_1 : i32, i32, i32
  }
  func.func @transform_2(%arg0: i32) -> (i32, i32, i32) {
    %c0_i32 = arith.constant 0 : i32
    %c0_i32_0 = arith.constant 0 : i32
    %c0_i32_1 = arith.constant 0 : i32
    %c0_i32_2 = arith.constant 0 : i32
    return %c0_i32, %c0_i32_0, %c0_i32_1 : i32, i32, i32
  }
  func.func @transform_3(%arg0: i32) -> (i32, i32) {
    %c0_i32 = arith.constant 0 : i32
    %c0_i32_0 = arith.constant 0 : i32
    %c0_i32_1 = arith.constant 0 : i32
    return %c0_i32, %c0_i32_0 : i32, i32
  }
  func.func @transform_4(%arg0: i32) -> (i32, i32) {
    %c0_i32 = arith.constant 0 : i32
    %c0_i32_0 = arith.constant 0 : i32
    %c0_i32_1 = arith.constant 0 : i32
    return %c0_i32, %c0_i32_0 : i32, i32
  }
  func.func @transform_5(%arg0: i32) -> (i32, i32) {
    %c0_i32 = arith.constant 0 : i32
    %c0_i32_0 = arith.constant 0 : i32
    %c0_i32_1 = arith.constant 0 : i32
    return %c0_i32, %c0_i32_0 : i32, i32
  }
  func.func @transform_6(%arg0: i32) -> (i32, i32) {
    %c0_i32 = arith.constant 0 : i32
    %c0_i32_0 = arith.constant 0 : i32
    return %c0_i32, %arg0 : i32, i32
  }
}

</mosaic_0001>

<bundles_post_ra>
// kernel: tpu_custom_call.1
= control target key start
LH: loop header
LB: loop body
LE: loop exit
PB: predicated region body
PF: predicated region fallthrough
CT: control target
= control target key end

     0   :  { %11 = vsyncpa [#allocation3], 0  ;;  %s11962_s0 = inlined_call_operand.vmem [shape: f32[8,512], index: 0, kind: input, shape index: {}]   ;;  %s11963_s1 = inlined_call_operand.vmem [shape: f32[3,8,8], index: 1, kind: input, shape index: {}]   ;;  %s11964_s2 = inlined_call_operand.vmem [shape: f32[3,8,8], index: 2, kind: input, shape index: {}]   ;;  %s11965_s3 = inlined_call_operand.vmem [shape: s32[1,256], index: 3, kind: input, shape index: {}]   ;;  %s11966_s4 = inlined_call_operand.vmem [shape: f32[256,8], index: 4, kind: input, shape index: {}]   ;;  %s11967_s5 = inlined_call_operand.vmem [shape: f32[8,256], index: 5, kind: input, shape index: {}]   ;;  %s11968_s6 = inlined_call_operand.hbm [shape: f32[8,512], index: 6, kind: output, shape index: {}]  }
   0x1   :  { %13 = vsyncpa [#allocation3 + $0x1], 0  ;;  %s10479_s21 = smov 0   ;;  %s10481_s22 = smov 0  }
   0x2   :  { %s10483_s23 = smov 0   ;;  %s10485_s24 = smov 0  }
   0x3 LB: > { %s10500_s25 = sadd.s32 4294967295, %s10437_s24   ;;  %s8593_s26 = sadd.s32 4294967294, %s10437_s24   ;;  %s10437_s24 = sphi %s10485_s24, %s12373_s24   ;;  %s10433_s23 = sphi %s10483_s23, %s12372_s23   ;;  %s10429_s22 = sphi %s10481_s22, %s12371_s22   ;;  %s10425_s21 = sphi %s10479_s21, %s12370_s21  }
   0x4   : > { %s10504_s27 = sadd.s32 1, %s10437_s24   ;;  %s157_s28 = sadd.s32 1, %s10433_s23 }
   0x5   : > { %s154_s29 = ssub.s32 %s10437_s24, %s10504_s27  ;;  %p167_p0 = scmp.ne.s32.totalorder %s10433_s23, %s10429_s22 }
   0x6   : > { %p155_p1 = scmp.eq.s32.totalorder %s154_s29, 0  ;;  %p168_p2 = scmp.eq.s32.totalorder %s10500_s25, 1 }
   0x7   : > { %p173_p3 = scmp.ne.s32.totalorder %s10429_s22, %s10425_s21  ;;  %p174_p4 = scmp.eq.s32.totalorder %s8593_s26, 1 }
   0x8   : > { %s10515_s30 = scalar_select %p155_p1, %s10433_s23, %s157_s28  }
   0x9   : > { %p10517_p5 = por %p168_p2, %p167_p0  ;;  %p10521_p6 = por %p174_p4, %p173_p3 }
   0xa   : > { %p8596_p7 = scmp.ge.s32.totalorder %s10437_s24, 1  ;;  %p216_p8 = scmp.lt.s32.totalorder %s10437_s24, 3 }
   0xc   : > { %p217_p9 = pnand %p8596_p7, %p216_p8 }
   0xe   : > { %220 = sbr.rel (%p217_p9) target bundleno = 3240 (0xca8), region = 44 }
  0x15   : > { %s8598_s9 = sshll.u32 %s10500_s25, 1  ;;  %v8600_v0 = vld [vmem:[%s11963_s1 + $0x8] sm:$0xff]  ;;  %vm337_vm0 = vcmask 64512   ;;  %v11994_v1 = vmov 0.0   ;;  %s10440_s16 = smov 127   ;;  %v10553_v20 = vld [vmem:[%s11966_s4 + $0x80] sm:$0xff] }
  0x16   : > { %p247_p10 = scmp.lt.s32.totalorder %s8598_s9, 3  ;;  %407 = vmatprep.mubr.f32.mxu0 %v11994_v1  ;;  %v339_v2 = vsel %vm337_vm0, %v8600_v0, 0  ;;  %s10441_s17 = smov 1   ;;  %v10558_v21 = vld [vmem:[%s11966_s4 + $0x88] sm:$0xff]  ;;  %v10563_v22 = vld [vmem:[%s11966_s4] sm:$0xff]  ;;  %v11992_v23 = vand.u32 4294901760, %v10553_v20 }
  0x17   : > { %v408_v3 = vand.u32 4294901760, %v339_v2  ;;  %v11991_v24 = vand.u32 4294901760, %v10558_v21  ;;  %v10570_v25 = vld [vmem:[%s11966_s4 + $0x8] sm:$0xff]  ;;  %v11990_v26 = vand.u32 4294901760, %v10563_v22  ;;  %v10576_v27 = vld [vmem:[%s11966_s4 + $0x90] sm:$0xff]  ;;  %v10581_v28 = vld [vmem:[%s11966_s4 + $0x98] sm:$0xff] }
  0x18   : > { %s12375_s9 = smov (!%p247_p10, %s8598_s9), 3  ;;  %v11989_v29 = vand.u32 4294901760, %v10570_v25  ;;  %v11988_v30 = vand.u32 4294901760, %v10576_v27  ;;  %v11987_v31 = vand.u32 4294901760, %v10581_v28  ;;  %v10589_v32 = vld [vmem:[%s11966_s4 + $0x10] sm:$0xff]  ;;  %v10594_v33 = vld [vmem:[%s11966_s4 + $0x18] sm:$0xff] }
  0x19   : > { %v409_v4 = vsub.f32 %v339_v2, %v408_v3  ;;  %s8599_s12 = sshll.u32 %s12375_s9, 3  ;;  %v10600_v34 = vpack.c.bf16 %v11991_v24, %v11992_v23  ;;  %v11986_v36 = vand.u32 4294901760, %v10589_v32  ;;  %v11985_v37 = vand.u32 4294901760, %v10594_v33  ;;  %v10620_v39 = vld [vmem:[%s11966_s4 + $0xa0] sm:$0xff]  ;;  %v10625_v40 = vld [vmem:[%s11966_s4 + $0xa8] sm:$0xff]  ;;  %v10658_v49 = vld [vmem:[%s11966_s4 + $0xb0] sm:$0xff] }
  0x1a   : > { %s10536_s15 = scalar_lea.vmem %s11962_s0, %s8599_s12  ;;  %v10606_v35 = vpack.c.bf16 %v11989_v29, %v11990_v26  ;;  %v10615_v38 = vpack.c.bf16 %v11987_v31, %v11988_v30  ;;  %v11984_v41 = vand.u32 4294901760, %v10620_v39  ;;  %v11983_v42 = vand.u32 4294901760, %v10625_v40  ;;  %v10633_v43 = vld [vmem:[%s11966_s4 + $0x20] sm:$0xff]  ;;  %v10638_v44 = vld [vmem:[%s11966_s4 + $0x28] sm:$0xff]  ;;  %v10663_v50 = vld [vmem:[%s11966_s4 + $0xb8] sm:$0xff]  ;;  %s243_s9 = sand.u32 1, %s10429_s22  }
  0x1b   : > { %v410_v5 = vand.u32 4294901760, %v409_v4  ;;  %v253_v6 = vld [vmem:[%s10536_s15] sm:$0xff]  ;;  %v254_v7 = vld [vmem:[%s10536_s15 + $0x8] sm:$0xff]  ;;  %12125 = vst [vmem:[#allocation5_spill] sm:$0xff] %v10600_v34  ;;  %9451 = vmatprep.subr.bf16.mxu1 %v10600_v34  ;;  %v10645_v45 = vpack.c.bf16 %v11985_v37, %v11986_v36  ;;  %v11980_v46 = vand.u32 4294901760, %v10633_v43  ;;  %v11979_v47 = vand.u32 4294901760, %v10638_v44 }
  0x1c   : > { %301 = vrot.lane.b32.xlu1 %v253_v6, %s10440_s16  ;;  %292 = vrot.lane.b32.xlu0 %v253_v6, %s10441_s17  ;;  %v341_v8 = vand.u32 4294901760, %v254_v7  ;;  %v343_v9 = vand.u32 4294901760, %v253_v6  ;;  %v10653_v48 = vpack.c.bf16 %v11983_v42, %v11984_v41  ;;  %v11978_v51 = vand.u32 4294901760, %v10658_v49  ;;  %v10671_v53 = vld [vmem:[%s11966_s4 + $0x30] sm:$0xff]  ;;  %v10676_v54 = vld [vmem:[%s11966_s4 + $0x38] sm:$0xff]  ;;  %s8597_s10 = sshll.u32 %s243_s9, 4 }
  0x1d   : > { %v411_v10 = vsub.f32 %v409_v4, %v410_v5  ;;  %9453 = vmatpush3.bf16.msra.mxu1 %v10606_v35  ;;  %v11977_v52 = vand.u32 4294901760, %v10663_v50  ;;  %v10683_v55 = vpack.c.bf16 %v11979_v47, %v11980_v46  ;;  %v11974_v56 = vand.u32 4294901760, %v10671_v53  ;;  %v10696_v59 = vld [vmem:[%s11966_s4 + $0xc0] sm:$0xff]  ;;  %v10701_v60 = vld [vmem:[%s11966_s4 + $0xc8] sm:$0xff]  ;;  %s8609_s11 = sshll.u32 %s10500_s25, 8  ;;  %s245_s12 = scalar_lea.vmem [#allocation2], %s8597_s10 }
  0x1e   : > { %342 = vmatprep.subr.mxu0 %v341_v8  ;;  %v420_v12 = vsub.f32 %v254_v7, %v341_v8  ;;  %v426_v13 = vsub.f32 %v253_v6, %v343_v9  ;;  %9455 = vmatprep.subr.bf16.mxu1 %v10615_v38  ;;  %v11973_v57 = vand.u32 4294901760, %v10676_v54  ;;  %v334_v61 = vld [vmem:[%s11963_s1] sm:$0xff]  ;;  %v11970_v62 = vand.u32 4294901760, %v10696_v59  ;;  %v10717_v2 = vld [vmem:[%s11966_s4 + $0x48] sm:$0xff]  ;;  %s8534_s13 = sshll.u32 %s245_s12, 4  ;;  %s11920_s19 = scalar_lea.hbm %s11968_s6, %s8609_s11  ;;  %s11922_s13 = int_to_ptr.vmem [resolvable:$true] %s8534_s13 }
  0x1f   : > { %v412_v11 = vand.u32 4294901760, %v411_v10  ;;  %344 = vmatpush1.msra.mxu0 %v343_v9  ;;  %v10691_v58 = vpack.c.bf16 %v11977_v52, %v11978_v51  ;;  %v11969_v63 = vand.u32 4294901760, %v10701_v60  ;;  %v10712_v0 = vld [vmem:[%s11966_s4 + $0x40] sm:$0xff]  ;;  %v11971_v6 = vand.u32 4294901760, %v10717_v2  ;;  %v10743_v10 = vld [vmem:[%s11966_s4 + $0xd8] sm:$0xff]  ;;  %s8520_s25 = scalar_lea.sflag [#allocation3], %s243_s9 }
  0x20   : > { %303 = vrot.lane.b32.xlu1 %v254_v7, %s10440_s16  ;;  %294 = vrot.lane.b32.xlu0 %v254_v7, %s10441_s17  ;;  %v421_v14 = vand.u32 4294901760, %v420_v12  ;;  %v427_v15 = vand.u32 4294901760, %v426_v13  ;;  %v807_v7 = vsel %vm337_vm0, %v334_v61, 0  ;;  %s10375_s20 = scalar_lea.vmem %s11922_s13, 256 }
  0x21   : > { %413 = vmatmul.mubr.f32.vlgmr.msra.gmra.mrb[0].mxu0 %v412_v11  ;;  %9457 = vmatpush3.bf16.msra.mxu1 %v10645_v45  ;;  %p10376_p11 = scmp.ne.s32.totalorder %s11922_s13, %s10375_s20 }
  0x22   : > { %v422_v16 = vsub.f32 %v420_v12, %v421_v14  ;;  %v428_v17 = vsub.f32 %v426_v13, %v427_v15  ;;  %493 = vmatprep.mubr.f32.mxu0 %v11994_v1  ;;  %9459 = vmatprep.subr.bf16.mxu1 %v10653_v48 }
  0x23   : > { %p10377_p12 = pnand %p10376_p11, %p10517_p5 }
  0x24   : > { %v423_v18 = vand.u32 4294901760, %v422_v16  ;;  %v429_v19 = vand.u32 4294901760, %v428_v17  ;;  %v10764_v17 = vand.u32 4294901760, %v807_v7 }
  0x25   : > { %9461 = vmatpush3.bf16.msra.mxu1 %v10683_v55  ;;  %p10378_p13 = pneg %p10377_p12 }
  0x26   : > { %424 = vmatprep.subr.mxu0 %v423_v18  ;;  %9463 = vmatprep.subr.bf16.mxu1 %v10691_v58 }
  0x27   : > { %430 = vmatpush1.msra.mxu0 %v429_v19 }
  0x28   : > { %503 = vmatprep.subr.mxu0 %v420_v12  ;;  %v11975_v12 = vand.u32 4294901760, %v10743_v10 }
  0x29   : > { %495 = vmatmul.mubr.f32.vlgmr.msra.gmra.mrb[0].mxu0 %v408_v3 }
  0x2a   : > { %506 = vmatpush1.msra.mxu0 %v426_v13  ;;  %569 = vmatprep.mubr.f32.mxu0 %v11994_v1  ;;  %v10751_v13 = vld [vmem:[%s11966_s4 + $0x50] sm:$0xff] }
  0x2b   : > { %579 = vmatprep.subr.mxu0 %v341_v8  ;;  %v11982_v19 = vand.u32 4294901760, %v10751_v13 }
  0x31   : > { %572 = vmatmul.mubr.f32.vlgmr.msra.gmra.mrb[0].mxu0 %v409_v4  ;;  %v10724_v4 = vpack.c.bf16 %v11973_v57, %v11974_v56  ;;  %v10442_v56 = vmov 0  }
  0x32   : > { %581 = vmatpush1.msra.mxu0 %v343_v9  ;;  %644 = vmatprep.mubr.f32.mxu0 %v11994_v1 }
  0x33   : > { %657 = vmatprep.subr.mxu0 %v421_v14  ;;  %12126 = vst [vmem:[#allocation6_spill] sm:$0xff] %v10724_v4  ;;  %9465 = vmatpush3.bf16.msra.mxu1 %v10724_v4  ;;  %v10756_v14 = vld [vmem:[%s11966_s4 + $0x58] sm:$0xff] }
  0x34   : > { %v11981_v61 = vand.u32 4294901760, %v10756_v14 }
  0x36   : > { %v10789_v57 = vpack.c.bf16 %v11981_v61, %v11982_v19 }
  0x38   : > { %12130 = vst [vmem:[#allocation10_spill] sm:$0xff] %v10789_v57 }
  0x39   : > { %648 = vmatmul.mubr.f32.vlgmr.msra.gmra.mrb[0].mxu0 %v410_v5  ;;  %v11972_v5 = vand.u32 4294901760, %v10712_v0 }
  0x3a   : > { %661 = vmatpush1.msra.mxu0 %v427_v15  ;;  %724 = vmatprep.mubr.f32.mxu0 %v11994_v1  ;;  %v255_v15 = vld [vmem:[%s11965_s3] sm:$0x3] }
  0x3b   : > { %733 = vmatprep.subr.mxu0 %v341_v8  ;;  %v10733_v8 = vpack.c.bf16 %v11969_v63, %v11970_v62  ;;  %v10770_v18 = vpack.c.bf16 %v11971_v6, %v11972_v5  ;;  %vm256_vm1 = vcmp.eq.s32.totalorder %v255_v15, 0  ;;  %v877_v5 = vsub.f32 %v807_v7, %v10764_v17 }
  0x3c   : > { %vm257_vm6 = vcmp.eq.s32.totalorder %v255_v15, 15 }
  0x3d   : > { %12127 = vst [vmem:[#allocation7_spill] sm:$0xff] %v10733_v8  ;;  %9467 = vmatprep.subr.bf16.mxu1 %v10733_v8  ;;  %12128 = vst [vmem:[#allocation8_spill] sm:$0xff] %v10770_v18  ;;  %v878_v47 = vand.u32 4294901760, %v877_v5 }
  0x3e   : > { %9469 = vmatpush3.bf16.msra.mxu1 %v10770_v18 }
  0x3f   : > { %v879_v7 = vsub.f32 %v877_v5, %v878_v47 }
  0x41   : > { %726 = vmatmul.mubr.f32.vlgmr.msra.gmra.mrb[0].mxu0 %v408_v3  ;;  %v880_v29 = vand.u32 4294901760, %v879_v7 }
  0x42   : > { %735 = vmatpush1.msra.mxu0 %v343_v9  ;;  %798 = vmatprep.mubr.f32.mxu0 %v11994_v1  ;;  %v10738_v9 = vld [vmem:[%s11966_s4 + $0xd0] sm:$0xff] }
  0x43   : > { %v11976_v11 = vand.u32 4294901760, %v10738_v9 }
  0x45   : > { %v10778_v63 = vpack.c.bf16 %v11975_v12, %v11976_v11  ;;  %v308_v12 = vsel %vm256_vm1, 1, %v10442_v56 }
  0x47   : > { %12129 = vst [vmem:[#allocation9_spill] sm:$0xff] %v10778_v63  ;;  %9471 = vmatprep.subr.bf16.mxu1 %v10778_v63 }
  0x48   : > { %9473 = vmatpush3.bf16.msra.mxu1 %v10789_v57 }
  0x49   : > { %800 = vmatmul.mubr.f32.vlgmr.msra.gmra.mrb[0].mxu0 %v408_v3  ;;  %v296_v3 = vlaneseq }
  0x4a   : > { %875 = vmatprep.mubr.f32.mxu0 %v11994_v1 }
  0x4b   : > { %v10761_v16 = vshrl.u32 %v296_v3, 7  ;;  %v10792_v11 = vand.u32 127, %v296_v3 }
  0x4d   : > { %v311_v62 = vsub.s32 0, %v10761_v16  ;;  %v315_v6 = vsub.s32 1, %v10761_v16  ;;  %12131 = vst [vmem:[#allocation11_spill] sm:$0xff] %v10792_v11  ;;  %vm305_vm2 = vcmp.lt.s32.totalorder %v10792_v11, 127  ;;  %vm298_vm3 = vcmp.lt.s32.totalorder %v10792_v11, 1 }
  0x4f   : > { %v10794_v52 = vrot.slane %v308_v12, %v311_v62  ;;  %v10796_v51 = vrot.slane %v308_v12, %v315_v6 }
  0x51   : > { %12132 = vst [vmem:[#allocation12_spill] sm:$0xff] %v10794_v52  ;;  %12133 = vst [vmem:[#allocation13_spill] sm:$0xff] %v10796_v51  ;;  %vm317_vm4 = vcmp.eq.s32.totalorder %v10794_v52, 1  ;;  %vm318_vm5 = vcmp.eq.s32.totalorder %v10796_v51, 1 }
  0x8e   : > { %v302_v16 = vpop.permute.xlu1 %301  ;;  %v293_v46 = vpop.permute.xlu0 %292 }
  0x92   : > { %v304_v61 = vpop.permute.xlu1 %303  ;;  %v295_v19 = vpop.permute.xlu0 %294 }
  0x93   : > { %v306_v3 = vsel %vm305_vm2, %v302_v16, %v304_v61  ;;  %v307_v12 = vsel %vm305_vm2, %v304_v61, %v302_v16  ;;  %v299_v42 = vsel %vm298_vm3, %v293_v46, %v295_v19  ;;  %v300_v41 = vsel %vm298_vm3, %v295_v19, %v293_v46 }
  0x94   : > { %v319_v37 = vsel %vm317_vm4, %v306_v3, %v300_v41  ;;  %v320_v36 = vsel %vm318_vm5, %v307_v12, %v299_v42 }
  0x95   : > { %v809_v31 = vand.u32 4294901760, %v320_v36  ;;  %v811_v30 = vand.u32 4294901760, %v319_v37 }
  0x97   : > { %v888_v26 = vsub.f32 %v320_v36, %v809_v31  ;;  %v894_v24 = vsub.f32 %v319_v37, %v811_v30  ;;  %810 = vmatprep.subr.mxu0 %v809_v31  ;;  %v321_v36 = vsel %vm257_vm6, 1, %v10442_v56 }
  0x98   : > { %812 = vmatpush1.msra.mxu0 %v811_v30  ;;  %v10817_v37 = vrot.slane %v321_v36, %v315_v6 }
  0x99   : > { %v895_v61 = vand.u32 4294901760, %v894_v24  ;;  %881 = vmatmul.mubr.f32.vlgmr.msra.gmra.mrb[0].mxu0 %v880_v29  ;;  %v889_v16 = vand.u32 4294901760, %v888_v26 }
  0x9a   : > { %961 = vmatprep.mubr.f32.mxu0 %v11994_v1  ;;  %12134 = vst [vmem:[#allocation14_spill] sm:$0xff] %v10817_v37  ;;  %vm331_vm7 = vcmp.eq.s32.totalorder %v10817_v37, 1 }
  0x9b   : > { %v890_v23 = vsub.f32 %v888_v26, %v889_v16  ;;  %v896_v46 = vsub.f32 %v894_v24, %v895_v61  ;;  %v333_v29 = vsel %vm331_vm7, %v299_v42, %v307_v12 }
  0x9d   : > { %v891_v19 = vand.u32 4294901760, %v890_v23  ;;  %v897_v52 = vand.u32 4294901760, %v896_v46  ;;  %v10821_v23 = vrot.slane %v321_v36, %v311_v62 }
  0x9f   : > { %892 = vmatprep.subr.mxu0 %v891_v19  ;;  %12135 = vst [vmem:[#allocation15_spill] sm:$0xff] %v10821_v23  ;;  %vm330_vm8 = vcmp.eq.s32.totalorder %v10821_v23, 1 }
  0xa0   : > { %898 = vmatpush1.msra.mxu0 %v897_v52  ;;  %v332_v56 = vsel %vm330_vm8, %v300_v41, %v306_v3 }
  0xa1   : > { %963 = vmatmul.mubr.f32.vlgmr.msra.gmra.mrb[0].mxu0 %v10764_v17  ;;  %971 = vmatprep.subr.mxu0 %v888_v26  ;;  %v1279_v26 = vand.u32 4294901760, %v333_v29  ;;  %v1281_v42 = vand.u32 4294901760, %v332_v56 }
  0xa2   : > { %974 = vmatpush1.msra.mxu0 %v894_v24  ;;  %1037 = vmatprep.mubr.f32.mxu0 %v11994_v1  ;;  %v8601_v24 = vld [vmem:[%s11963_s1 + $0x10] sm:$0xff] }
  0xa3   : > { %1047 = vmatprep.subr.mxu0 %v809_v31  ;;  %v1277_v52 = vsel %vm337_vm0, %v8601_v24, 0  ;;  %v1358_v62 = vsub.f32 %v333_v29, %v1279_v26  ;;  %v270_v29 = vld [vmem:[%s11966_s4 + $0x60] sm:$0xff]  ;;  %v271_v24 = vld [vmem:[%s11966_s4 + $0x68] sm:$0xff] }
  0xa5   : > { %v1359_v6 = vand.u32 4294901760, %v1358_v62 }
  0xa7   : > { %v1360_v7 = vsub.f32 %v1358_v62, %v1359_v6 }
  0xa9   : > { %1040 = vmatmul.mubr.f32.vlgmr.msra.gmra.mrb[0].mxu0 %v877_v5  ;;  %v1346_v5 = vand.u32 4294901760, %v1277_v52 }
  0xaa   : > { %1049 = vmatpush1.msra.mxu0 %v811_v30  ;;  %1112 = vmatprep.mubr.f32.mxu0 %v11994_v1 }
  0xab   : > { %1125 = vmatprep.subr.mxu0 %v889_v16  ;;  %v1347_v15 = vsub.f32 %v1277_v52, %v1346_v5  ;;  %v1786_v52 = vand.u32 4294901760, %v271_v24 }
  0xad   : > { %v1348_v12 = vand.u32 4294901760, %v1347_v15 }
  0xaf   : > { %v1349_v16 = vsub.f32 %v1347_v15, %v1348_v12 }
  0xb1   : > { %1116 = vmatmul.mubr.f32.vlgmr.msra.gmra.mrb[0].mxu0 %v878_v47  ;;  %v1364_v47 = vsub.f32 %v332_v56, %v1281_v42  ;;  %v1350_v3 = vand.u32 4294901760, %v1349_v16  ;;  %v12139_v16 = vand.u32 4294901760, %v10553_v20 }
  0xb2   : > { %1129 = vmatpush1.msra.mxu0 %v895_v61  ;;  %1192 = vmatprep.mubr.f32.mxu0 %v11994_v1 }
  0xb3   : > { %1201 = vmatprep.subr.mxu0 %v809_v31  ;;  %v1365_v61 = vand.u32 4294901760, %v1364_v47  ;;  %v1361_v31 = vand.u32 4294901760, %v1360_v7  ;;  %v273_v7 = vld [vmem:[%s11966_s4 + $0x78] sm:$0xff] }
  0xb5   : > { %v1366_v41 = vsub.f32 %v1364_v47, %v1365_v61 }
  0xb7   : > { %v1367_v46 = vand.u32 4294901760, %v1366_v41  ;;  %v10891_v41 = vsub.f32 %v10553_v20, %v12139_v16 }
  0xb9   : > { %1194 = vmatmul.mubr.f32.vlgmr.msra.gmra.mrb[0].mxu0 %v10764_v17  ;;  %12140 = vst [vmem:[#allocation19_spill] sm:$0xff] %v10891_v41  ;;  %v12007_v23 = vand.u32 4294901760, %v10891_v41 }
  0xba   : > { %1203 = vmatpush1.msra.mxu0 %v811_v30  ;;  %1266 = vmatprep.mubr.f32.mxu0 %v11994_v1  ;;  %v286_v30 = vld [vmem:[%s11966_s4 + $0xe0] sm:$0xff] }
  0xbb   : > { %1280 = vmatprep.subr.mxu0 %v1279_v26  ;;  %v1831_v19 = vand.u32 4294901760, %v286_v30  ;;  %v1974_v20 = vsub.f32 %v10891_v41, %v12007_v23 }
  0xbd   : > { %v1975_v16 = vand.u32 4294901760, %v1974_v20  ;;  %v10916_v11 = vsub.f32 %v286_v30, %v1831_v19 }
  0xbf   : > { %12145 = vst [vmem:[#allocation23_spill] sm:$0xff] %v10916_v11 }
  0xc1   : > { %1268 = vmatmul.mubr.f32.vlgmr.msra.gmra.mrb[0].mxu0 %v10764_v17  ;;  %v287_v17 = vld [vmem:[%s11966_s4 + $0xe8] sm:$0xff] }
  0xc2   : > { %1282 = vmatpush1.msra.mxu0 %v1281_v42  ;;  %1345 = vmatprep.mubr.f32.mxu0 %v11994_v1  ;;  %v1834_v36 = vand.u32 4294901760, %v287_v17 }
  0xc3   : > { %1362 = vmatprep.subr.mxu0 %v1361_v31 }
  0xc4   : > { %v10866_v56 = vpack.c.bf16 %v1834_v36, %v1831_v19 }
  0xc6   : > { %12136 = vst [vmem:[#allocation16_spill] sm:$0xff] %v10866_v56  ;;  %9475 = vmatprep.subr.bf16.mxu1 %v10866_v56 }
  0xc9   : > { %1351 = vmatmul.mubr.f32.vlgmr.msra.gmra.mrb[0].mxu0 %v1350_v3  ;;  %v12141_v3 = vand.u32 4294901760, %v10558_v21 }
  0xca   : > { %1368 = vmatpush1.msra.mxu0 %v1367_v46  ;;  %1431 = vmatprep.mubr.f32.mxu0 %v11994_v1 }
  0xcb   : > { %1441 = vmatprep.subr.mxu0 %v1358_v62  ;;  %v10896_v46 = vsub.f32 %v10558_v21, %v12141_v3 }
  0xcd   : > { %12142 = vst [vmem:[#allocation20_spill] sm:$0xff] %v10896_v46  ;;  %v12010_v37 = vand.u32 4294901760, %v10896_v46 }
  0xcf   : > { %v1981_v21 = vsub.f32 %v10896_v46, %v12010_v37  ;;  %v1951_v37 = vsub.f32 %v271_v24, %v1786_v52 }
  0xd1   : > { %1433 = vmatmul.mubr.f32.vlgmr.msra.gmra.mrb[0].mxu0 %v1346_v5  ;;  %v1982_v3 = vand.u32 4294901760, %v1981_v21  ;;  %v1952_v19 = vand.u32 4294901760, %v1951_v37 }
  0xd2   : > { %1444 = vmatpush1.msra.mxu0 %v1364_v47  ;;  %1507 = vmatprep.mubr.f32.mxu0 %v11994_v1  ;;  %v272_v47 = vld [vmem:[%s11966_s4 + $0x70] sm:$0xff] }
  0xd3   : > { %1517 = vmatprep.subr.mxu0 %v1279_v26  ;;  %v10913_v51 = vpack.c.bf16 %v1982_v3, %v1975_v16 }
  0xd5   : > { %12144 = vst [vmem:[#allocation22_spill] sm:$0xff] %v10913_v51 }
  0xd9   : > { %1510 = vmatmul.mubr.f32.vlgmr.msra.gmra.mrb[0].mxu0 %v1347_v15 }
  0xda   : > { %1519 = vmatpush1.msra.mxu0 %v1281_v42  ;;  %1582 = vmatprep.mubr.f32.mxu0 %v11994_v1 }
  0xdb   : > { %1595 = vmatprep.subr.mxu0 %v1359_v6 }
  0xe1   : > { %1586 = vmatmul.mubr.f32.vlgmr.msra.gmra.mrb[0].mxu0 %v1348_v12  ;;  %v1789_v12 = vand.u32 4294901760, %v272_v47 }
  0xe2   : > { %1599 = vmatpush1.msra.mxu0 %v1365_v61  ;;  %1662 = vmatprep.mubr.f32.mxu0 %v11994_v1  ;;  %v1792_v61 = vand.u32 4294901760, %v273_v7 }
  0xe3   : > { %1671 = vmatprep.subr.mxu0 %v1279_v26  ;;  %v1783_v26 = vand.u32 4294901760, %v270_v29 }
  0xe4   : > { %v1965_v24 = vsub.f32 %v273_v7, %v1792_v61 }
  0xe5   : > { %v10868_v62 = vpack.c.bf16 %v1786_v52, %v1783_v26 }
  0xe7   : > { %12137 = vst [vmem:[#allocation17_spill] sm:$0xff] %v10868_v62  ;;  %9477 = vmatpush3.bf16.msra.mxu1 %v10868_v62 }
  0xe9   : > { %1664 = vmatmul.mubr.f32.vlgmr.msra.gmra.mrb[0].mxu0 %v1346_v5 }
  0xea   : > { %1673 = vmatpush1.msra.mxu0 %v1281_v42  ;;  %1736 = vmatprep.mubr.f32.mxu0 %v11994_v1  ;;  %v289_v42 = vld [vmem:[%s11966_s4 + $0xf8] sm:$0xff]  ;;  %v10898_v1 = vpack.c.bf16 %v1792_v61, %v1789_v12 }
  0xeb   : > { %9547 = vmatprep.subr.bf16.mxu0 %v10600_v34  ;;  %v1840_v15 = vand.u32 4294901760, %v289_v42 }
  0xec   : > { %12143 = vst [vmem:[#allocation21_spill] sm:$0xff] %v10898_v1 }
  0xed   : > { %v10930_v3 = vsub.f32 %v289_v42, %v1840_v15 }
  0xef   : > { %12148 = vst [vmem:[#allocation26_spill] sm:$0xff] %v10930_v3 }
  0xf1   : > { %1738 = vmatmul.mubr.f32.vlgmr.msra.gmra.mrb[0].mxu0 %v1346_v5  ;;  %v288_v5 = vld [vmem:[%s11966_s4 + $0xf0] sm:$0xff] }
  0xf2   : > { %9549 = vmatpush3.bf16.msra.mxu0 %v10606_v35  ;;  %v1837_v6 = vand.u32 4294901760, %v288_v5 }
  0xf3   : > { %9551 = vmatprep.subr.bf16.mxu0 %v10615_v38 }
  0xf4   : > { %v10886_v31 = vpack.c.bf16 %v1840_v15, %v1837_v6  ;;  %v10925_v21 = vsub.f32 %v288_v5, %v1837_v6  ;;  %v1966_v15 = vand.u32 4294901760, %v1965_v24 }
  0xf6   : > { %9553 = vmatpush3.bf16.msra.mxu0 %v10645_v45  ;;  %12138 = vst [vmem:[#allocation18_spill] sm:$0xff] %v10886_v31  ;;  %9479 = vmatprep.subr.bf16.mxu1 %v10886_v31  ;;  %12147 = vst [vmem:[#allocation25_spill] sm:$0xff] %v10925_v21  ;;  %v1967_v7 = vsub.f32 %v1965_v24, %v1966_v15 }
  0xf7   : > { %9555 = vmatprep.subr.bf16.mxu0 %v10653_v48  ;;  %9481 = vmatpush3.bf16.msra.mxu1 %v10898_v1 }
  0xf8   : > { %9483 = vmatprep.subr.bf16.mxu1 %v10913_v51  ;;  %v12019_v51 = vand.u32 4294901760, %v10930_v3 }
  0xfa   : > { %9557 = vmatpush3.bf16.msra.mxu0 %v10683_v55  ;;  %v2079_v42 = vsub.f32 %v10930_v3, %v12019_v51 }
  0xfb   : > { %9559 = vmatprep.subr.bf16.mxu0 %v10691_v58 }
  0xfe   : > { %9561 = vmatpush3.bf16.msra.mxu0 %v10724_v4 }
  0xff   : > { %9563 = vmatprep.subr.bf16.mxu0 %v10733_v8 }
 0x102   : > { %9565 = vmatpush3.bf16.msra.mxu0 %v10770_v18 }
 0x103   : > { %9567 = vmatprep.subr.bf16.mxu0 %v10778_v63 }
 0x106   : > { %9569 = vmatpush3.bf16.msra.mxu0 %v10789_v57  ;;  %v1968_v57 = vand.u32 4294901760, %v1967_v7 }
 0x107   : > { %9571 = vmatprep.subr.bf16.mxu0 %v10866_v56  ;;  %v2080_v56 = vand.u32 4294901760, %v2079_v42 }
 0x10a   : > { %9573 = vmatpush3.bf16.msra.mxu0 %v10868_v62 }
 0x10b   : > { %9575 = vmatprep.subr.bf16.mxu0 %v10886_v31  ;;  %v10919_v31 = vsub.f32 %v287_v17, %v1834_v36  ;;  %v12020_v36 = vand.u32 4294901760, %v10925_v21 }
 0x10d   : > { %12146 = vst [vmem:[#allocation24_spill] sm:$0xff] %v10919_v31  ;;  %v12014_v62 = vand.u32 4294901760, %v10919_v31 }
 0x10e   : > { %9577 = vmatpush3.bf16.msra.mxu0 %v10898_v1  ;;  %v12011_v1 = vand.u32 4294901760, %v10916_v11 }
 0x10f   : > { %9611 = vmatprep.subr.bf16.mxu0 %v10600_v34  ;;  %v1944_v34 = vsub.f32 %v270_v29, %v1783_v26  ;;  %v2065_v30 = vsub.f32 %v10919_v31, %v12014_v62  ;;  %v1958_v29 = vsub.f32 %v272_v47, %v1789_v12 }
 0x110   : > { %v2058_v23 = vsub.f32 %v10916_v11, %v12011_v1  ;;  %v1953_v1 = vsub.f32 %v1951_v37, %v1952_v19 }
 0x111   : > { %v1945_v20 = vand.u32 4294901760, %v1944_v34  ;;  %v2066_v26 = vand.u32 4294901760, %v2065_v30  ;;  %v1959_v5 = vand.u32 4294901760, %v1958_v29 }
 0x112   : > { %v2059_v16 = vand.u32 4294901760, %v2058_v23  ;;  %v2072_v23 = vsub.f32 %v10925_v21, %v12020_v36  ;;  %v1954_v62 = vand.u32 4294901760, %v1953_v1 }
 0x113   : > { %v1946_v17 = vsub.f32 %v1944_v34, %v1945_v20  ;;  %v1960_v12 = vsub.f32 %v1958_v29, %v1959_v5  ;;  %v10966_v42 = vpack.c.bf16 %v1966_v15, %v1959_v5  ;;  %v12161_v15 = vand.u32 4294901760, %v10589_v32 }
 0x114   : > { %v10937_v6 = vpack.c.bf16 %v2066_v26, %v2059_v16  ;;  %v2073_v47 = vand.u32 4294901760, %v2072_v23  ;;  %v10948_v16 = vpack.c.bf16 %v10896_v46, %v10891_v41  ;;  %v10954_v26 = vpack.c.bf16 %v10919_v31, %v10916_v11 }
 0x115   : > { %v1947_v52 = vand.u32 4294901760, %v1946_v17  ;;  %v1961_v61 = vand.u32 4294901760, %v1960_v12  ;;  %v10956_v23 = vpack.c.bf16 %v1951_v37, %v1944_v34  ;;  %12156 = vst [vmem:[#allocation34_spill] sm:$0xff] %v10966_v42  ;;  %v12158_v12 = vand.u32 4294901760, %v10570_v25 }
 0x116   : > { %v10944_v17 = vpack.c.bf16 %v2080_v56, %v2073_v47  ;;  %12149 = vst [vmem:[#allocation27_spill] sm:$0xff] %v10948_v16  ;;  %12151 = vst [vmem:[#allocation29_spill] sm:$0xff] %v10954_v26  ;;  %v10964_v56 = vpack.c.bf16 %v1952_v19, %v1945_v20  ;;  %v12157_v47 = vand.u32 4294901760, %v10563_v22  ;;  %v12160_v19 = vand.u32 4294901760, %v10581_v28 }
 0x117   : > { %v10942_v30 = vpack.c.bf16 %v1954_v62, %v1947_v52  ;;  %v10950_v1 = vpack.c.bf16 %v1968_v57, %v1961_v61  ;;  %12152 = vst [vmem:[#allocation30_spill] sm:$0xff] %v10956_v23  ;;  %v10960_v62 = vpack.c.bf16 %v10930_v3, %v10925_v21  ;;  %v10962_v52 = vpack.c.bf16 %v1965_v24, %v1958_v29 }
 0x118   : > { %12155 = vst [vmem:[#allocation33_spill] sm:$0xff] %v10964_v56  ;;  %v10971_v57 = vsub.f32 %v10563_v22, %v12157_v47  ;;  %v10976_v34 = vsub.f32 %v10570_v25, %v12158_v12  ;;  %v12159_v29 = vand.u32 4294901760, %v10576_v27  ;;  %v10988_v24 = vsub.f32 %v10581_v28, %v12160_v19 }
 0x119   : > { %12150 = vst [vmem:[#allocation28_spill] sm:$0xff] %v10950_v1  ;;  %12153 = vst [vmem:[#allocation31_spill] sm:$0xff] %v10960_v62  ;;  %v12162_v61 = vand.u32 4294901760, %v10594_v33  ;;  %v12163_v12 = vand.u32 4294901760, %v10620_v39  ;;  %v12164_v19 = vand.u32 4294901760, %v10625_v40 }
 0x11a   : > { %12154 = vst [vmem:[#allocation32_spill] sm:$0xff] %v10962_v52  ;;  %v12023_v37 = vand.u32 4294901760, %v10971_v57  ;;  %v12021_v7 = vand.u32 4294901760, %v10976_v34  ;;  %v10983_v20 = vsub.f32 %v10576_v27, %v12159_v29  ;;  %v11000_v27 = vsub.f32 %v10589_v32, %v12161_v15 }
 0x11b   : > { %v11005_v28 = vsub.f32 %v10594_v33, %v12162_v61  ;;  %v12024_v47 = vand.u32 4294901760, %v10988_v24  ;;  %v11011_v29 = vsub.f32 %v10620_v39, %v12163_v12  ;;  %v11016_v51 = vsub.f32 %v10625_v40, %v12164_v19 }
 0x11c   : > { %v1862_v22 = vsub.f32 %v10971_v57, %v12023_v37  ;;  %v1869_v25 = vsub.f32 %v10976_v34, %v12021_v7  ;;  %v12022_v5 = vand.u32 4294901760, %v10983_v20  ;;  %v12027_v33 = vand.u32 4294901760, %v11000_v27 }
 0x11d   : > { %v1995_v39 = vsub.f32 %v10988_v24, %v12024_v47  ;;  %v12165_v7 = vand.u32 4294901760, %v10633_v43  ;;  %v12167_v19 = vand.u32 4294901760, %v10638_v44  ;;  %v12168_v37 = vand.u32 4294901760, %v10658_v49 }
 0x11e   : > { %v1863_v36 = vand.u32 4294901760, %v1862_v22  ;;  %v1870_v32 = vand.u32 4294901760, %v1869_v25  ;;  %v1988_v15 = vsub.f32 %v10983_v20, %v12022_v5 }
 0x11f   : > { %v11030_v40 = vsub.f32 %v10633_v43, %v12165_v7  ;;  %v11038_v5 = vsub.f32 %v10638_v44, %v12167_v19  ;;  %v11043_v47 = vsub.f32 %v10658_v49, %v12168_v37  ;;  %v12170_v7 = vand.u32 4294901760, %v10663_v50 }
 0x120   : > { %v11050_v43 = vpack.c.bf16 %v1870_v32, %v1863_v36  ;;  %v1989_v19 = vand.u32 4294901760, %v1988_v15  ;;  %v1876_v49 = vsub.f32 %v11000_v27, %v12027_v33  ;;  %v12171_v37 = vand.u32 4294901760, %v11005_v28 }
 0x121   : > { %v11055_v25 = vsub.f32 %v10663_v50, %v12170_v7  ;;  %v1996_v32 = vand.u32 4294901760, %v1995_v39  ;;  %v12173_v50 = vand.u32 4294901760, %v11011_v29  ;;  %v12174_v33 = vand.u32 4294901760, %v11016_v51 }
 0x122   : > { %v1883_v42 = vsub.f32 %v11005_v28, %v12171_v37  ;;  %v1877_v11 = vand.u32 4294901760, %v1876_v49 }
 0x123   : > { %v2002_v7 = vsub.f32 %v11011_v29, %v12173_v50  ;;  %v2009_v3 = vsub.f32 %v11016_v51, %v12174_v33  ;;  %v12175_v50 = vand.u32 4294901760, %v10671_v53  ;;  %v11102_v46 = vpack.c.bf16 %v1996_v32, %v1989_v19 }
 0x124   : > { %v1884_v37 = vand.u32 4294901760, %v1883_v42  ;;  %v12179_v42 = vand.u32 4294901760, %v11030_v40  ;;  %v12181_v19 = vand.u32 4294901760, %v11043_v47 }
 0x125   : > { %v11088_v56 = vsub.f32 %v10671_v53, %v12175_v50  ;;  %v2003_v53 = vand.u32 4294901760, %v2002_v7  ;;  %v12178_v50 = vand.u32 4294901760, %v10701_v60 }
 0x126   : > { %v1890_v49 = vsub.f32 %v11030_v40, %v12179_v42  ;;  %v2016_v32 = vsub.f32 %v11043_v47, %v12181_v19  ;;  %v12184_v19 = vand.u32 4294901760, %v10717_v2  ;;  %v12186_v42 = vand.u32 4294901760, %v10743_v10 }
 0x127   : > { %v11107_v41 = vsub.f32 %v10701_v60, %v12178_v50  ;;  %v12182_v60 = vand.u32 4294901760, %v11055_v25  ;;  %v12187_v23 = vand.u32 4294901760, %v11088_v56 }
 0x129   : > { %v2023_v7 = vsub.f32 %v11055_v25, %v12182_v60  ;;  %v11135_v60 = vsub.f32 %v10717_v2, %v12184_v19  ;;  %v1891_v19 = vand.u32 4294901760, %v1890_v49 }
 0x1c4   : > { %v11032_v22 = vpop.f32.mrb[0].mxu0 }
 0x1c5   : > { %12166 = vst [vmem:[#allocation35_spill] sm:$0xff] %v11032_v22  ;;  %v11046_v12 = vand.u32 4294901760, %v11032_v22  ;;  %v11048_v61 = vpop.f32.mrb[1].mxu0 }
 0x1c6   : > { %12169 = vst [vmem:[#allocation36_spill] sm:$0xff] %v11048_v61  ;;  %v11058_v44 = vand.u32 4294901760, %v11048_v61 }
 0x1c7   : > { %v11068_v36 = vsub.f32 %v11032_v22, %v11046_v12  ;;  %v12177_v22 = vand.u32 4294901760, %v10696_v59 }
 0x1c8   : > { %v11076_v15 = vsub.f32 %v11048_v61, %v11058_v44  ;;  %v12176_v61 = vand.u32 4294901760, %v10676_v54 }
 0x1c9   : > { %12172 = vst [vmem:[#allocation37_spill] sm:$0xff] %v11068_v36  ;;  %v1850_v39 = vand.u32 4294901760, %v11068_v36  ;;  %v11099_v52 = vsub.f32 %v10696_v59, %v12177_v22  ;;  %v12180_v59 = vand.u32 4294901760, %v11038_v5 }
 0x1ca   : > { %v11093_v31 = vsub.f32 %v10676_v54, %v12176_v61  ;;  %v1844_v33 = vand.u32 4294901760, %v11076_v15  ;;  %v2010_v61 = vand.u32 4294901760, %v2009_v3 }
 0x1cb   : > { %v1851_v21 = vsub.f32 %v11068_v36, %v1850_v39  ;;  %v1897_v22 = vsub.f32 %v11038_v5, %v12180_v59  ;;  %v12185_v36 = vand.u32 4294901760, %v10738_v9  ;;  %v12191_v49 = vand.u32 4294901760, %v11099_v52 }
 0x1cc   : > { %2327 = vmatprep.mubr.f32.mxu0 %v1844_v33  ;;  %v1845_v54 = vsub.f32 %v11076_v15, %v1844_v33  ;;  %v11151_v2 = vpack.c.bf16 %v2010_v61, %v2003_v53  ;;  %v2024_v33 = vand.u32 4294901760, %v2023_v7  ;;  %v12190_v61 = vand.u32 4294901760, %v10756_v14 }
 0x1cd   : > { %2331 = vmatmul.mubr.f32.vlgmr.msra.gmra.mrb[2].mxu0 %v1850_v39  ;;  %v12183_v39 = vand.u32 4294901760, %v10712_v0  ;;  %v1852_v3 = vand.u32 4294901760, %v1851_v21  ;;  %v1898_v62 = vand.u32 4294901760, %v1897_v22  ;;  %v2017_v21 = vand.u32 4294901760, %v2016_v32 }
 0x1ce   : > { %9613 = vmatpush3.bf16.msra.mxu0 %v10606_v35  ;;  %2601 = vmatprep.mubr.f32.mxu0 %v11058_v44  ;;  %v1846_v50 = vand.u32 4294901760, %v1845_v54  ;;  %v11142_v54 = vsub.f32 %v10738_v9, %v12185_v36  ;;  %v1904_v9 = vsub.f32 %v11088_v56, %v12187_v23  ;;  %v12188_v36 = vand.u32 4294901760, %v11093_v31 }
 0x1cf   : > { %v11130_v59 = vsub.f32 %v10712_v0, %v12183_v39  ;;  %9615 = vmatprep.subr.bf16.mxu0 %v10615_v38  ;;  %v11147_v0 = vsub.f32 %v10743_v10, %v12186_v42  ;;  %v11149_v39 = vpack.c.bf16 %v1884_v37, %v1877_v11  ;;  %v12041_v11 = vand.u32 4294901760, %v11135_v60 }
 0x1d0   : > { %1847 = vmatprep.mubr.f32.mxu1 %v1846_v50  ;;  %v1911_v26 = vsub.f32 %v11093_v31, %v12188_v36  ;;  %v12189_v37 = vand.u32 4294901760, %v10751_v13  ;;  %v11171_v23 = vsub.f32 %v10756_v14, %v12190_v61  ;;  %v2030_v22 = vsub.f32 %v11099_v52, %v12191_v49 }
 0x1d1   : > { %1853 = vmatmul.mubr.f32.vlgmr.msra.gmra.mrb[0].mxu1 %v1852_v3  ;;  %v12046_v10 = vand.u32 4294901760, %v11130_v59  ;;  %v12192_v32 = vand.u32 4294901760, %v11107_v41  ;;  %v12042_v3 = vand.u32 4294901760, %v11147_v0  ;;  %v11184_v14 = vpack.c.bf16 %v1898_v62, %v1891_v19 }
 0x1d2   : > { %9485 = vmatpush3.bf16.msra.mxu1 %v11050_v43  ;;  %9617 = vmatpush3.bf16.msra.mxu0 %v10645_v45  ;;  %v11166_v53 = vsub.f32 %v10751_v13, %v12189_v37  ;;  %v12045_v13 = vand.u32 4294901760, %v11142_v54  ;;  %v11186_v50 = vpack.c.bf16 %v2024_v33, %v2017_v21  ;;  %v1905_v42 = vand.u32 4294901760, %v1904_v9 }
 0x1d3   : > { %2083 = vmatprep.mubr.f32.mxu1 %v11058_v44  ;;  %9487 = vmatprep.subr.bf16.mxu1 %v11102_v46  ;;  %v2037_v7 = vsub.f32 %v11107_v41, %v12192_v32  ;;  %v1912_v36 = vand.u32 4294901760, %v1911_v26  ;;  %v1918_v37 = vsub.f32 %v11130_v59, %v12046_v10  ;;  %v1925_v61 = vsub.f32 %v11135_v60, %v12041_v11 }
 0x1d4   : > { %9619 = vmatprep.subr.bf16.mxu0 %v10653_v48  ;;  %v12043_v49 = vand.u32 4294901760, %v11166_v53  ;;  %v12044_v62 = vand.u32 4294901760, %v11171_v23  ;;  %v2031_v26 = vand.u32 4294901760, %v2030_v22  ;;  %v2044_v19 = vsub.f32 %v11142_v54, %v12045_v13 }
 0x1d5   : > { %v2038_v33 = vand.u32 4294901760, %v2037_v7  ;;  %v2051_v21 = vsub.f32 %v11147_v0, %v12042_v3  ;;  %v11206_v9 = vpack.c.bf16 %v1912_v36, %v1905_v42  ;;  %v1919_v32 = vand.u32 4294901760, %v1918_v37 }
 0x1d6   : > { %9489 = vmatpush3.bf16.msra.mxu1 %v11149_v39  ;;  %9621 = vmatpush3.bf16.msra.mxu0 %v10683_v55  ;;  %v1926_v11 = vand.u32 4294901760, %v1925_v61  ;;  %v1932_v22 = vsub.f32 %v11166_v53, %v12043_v49  ;;  %v1939_v7 = vsub.f32 %v11171_v23, %v12044_v62  ;;  %v2045_v36 = vand.u32 4294901760, %v2044_v19  ;;  %v12194_v19 = vld [vmem:[#allocation16_spill] sm:$0xff] }
 0x1d7   : > { %9491 = vmatprep.subr.bf16.mxu1 %v11151_v2  ;;  %9623 = vmatprep.subr.bf16.mxu0 %v10691_v58  ;;  %v11218_v42 = vpack.c.bf16 %v2038_v33, %v2031_v26  ;;  %v2052_v3 = vand.u32 4294901760, %v2051_v21  ;;  %v12193_v26 = vld [vmem:[#allocation10_spill] sm:$0xff]  ;;  %v11284_v13 = vpack.c.bf16 %v11093_v31, %v11088_v56  ;;  %v11289_v10 = vpack.c.bf16 %v11107_v41, %v11099_v52 }
 0x1d8   : > { %v11222_v37 = vpack.c.bf16 %v1926_v11, %v1919_v32  ;;  %v1933_v61 = vand.u32 4294901760, %v1932_v22  ;;  %v1940_v49 = vand.u32 4294901760, %v1939_v7  ;;  %v12195_v11 = vld [vmem:[#allocation17_spill] sm:$0xff]  ;;  %v12196_v21 = vld [vmem:[#allocation18_spill] sm:$0xff]  ;;  %v11246_v32 = vpack.c.bf16 %v10976_v34, %v10971_v57 }
 0x1d9   : > { %v11226_v62 = vpack.c.bf16 %v2052_v3, %v2045_v36  ;;  %v12197_v3 = vld [vmem:[#allocation21_spill] sm:$0xff]  ;;  %v11252_v22 = vpack.c.bf16 %v10988_v24, %v10983_v20  ;;  %v11260_v7 = vpack.c.bf16 %v11005_v28, %v11000_v27  ;;  %v11265_v36 = vpack.c.bf16 %v11016_v51, %v11011_v29  ;;  %12205 = vst [vmem:[#allocation43_spill] sm:$0xff] %v11284_v13 }
 0x1da   : > { %9493 = vmatpush3.bf16.msra.mxu1 %v11184_v14  ;;  %9625 = vmatpush3.bf16.msra.mxu0 %v10724_v4  ;;  %v11230_v33 = vpack.c.bf16 %v1940_v49, %v1933_v61  ;;  %v12198_v49 = vld [vmem:[#allocation5_spill] sm:$0xff]  ;;  %v11272_v61 = vpack.c.bf16 %v11038_v5, %v11030_v40  ;;  %12206 = vst [vmem:[#allocation44_spill] sm:$0xff] %v11289_v10 }
 0x1db   : > { %9495 = vmatprep.subr.bf16.mxu1 %v11186_v50  ;;  %9627 = vmatprep.subr.bf16.mxu0 %v10733_v8  ;;  %12199 = vst [vmem:[#allocation5_spill] sm:$0xff] %v11246_v32  ;;  %12200 = vst [vmem:[#allocation38_spill] sm:$0xff] %v11252_v22 }
 0x1dc   : > { %12201 = vst [vmem:[#allocation39_spill] sm:$0xff] %v11260_v7  ;;  %12202 = vst [vmem:[#allocation40_spill] sm:$0xff] %v11265_v36 }
 0x1dd   : > { %12203 = vst [vmem:[#allocation41_spill] sm:$0xff] %v11272_v61 }
 0x1de   : > { %9497 = vmatpush3.bf16.msra.mxu1 %v11206_v9  ;;  %9629 = vmatpush3.bf16.msra.mxu0 %v10770_v18 }
 0x1df   : > { %9499 = vmatprep.subr.bf16.mxu1 %v11218_v42  ;;  %9631 = vmatprep.subr.bf16.mxu0 %v10778_v63 }
 0x1e2   : > { %9501 = vmatpush3.bf16.msra.mxu1 %v11222_v37  ;;  %9633 = vmatpush3.bf16.msra.mxu0 %v12193_v26 }
 0x1e3   : > { %9503 = vmatprep.subr.bf16.mxu1 %v11226_v62  ;;  %9635 = vmatprep.subr.bf16.mxu0 %v12194_v19 }
 0x1e6   : > { %9505 = vmatpush3.bf16.msra.mxu1 %v11230_v33  ;;  %9637 = vmatpush3.bf16.msra.mxu0 %v12195_v11 }
 0x1e7   : > { %9507 = vmatprep.subr.bf16.mxu1 %v10937_v6  ;;  %9639 = vmatprep.subr.bf16.mxu0 %v12196_v21 }
 0x1ea   : > { %9509 = vmatpush3.bf16.msra.mxu1 %v10942_v30  ;;  %9641 = vmatpush3.bf16.msra.mxu0 %v12197_v3 }
 0x1eb   : > { %9511 = vmatprep.subr.bf16.mxu1 %v10944_v17  ;;  %9643 = vmatprep.subr.bf16.mxu0 %v12198_v49 }
 0x1ed   : > { %2603 = vmatmul.mubr.f32.vlgmr.msra.gmra.mrb[4].mxu0 %v11046_v12 }
 0x1ee   : > { %9513 = vmatpush3.bf16.msra.mxu1 %v10950_v1  ;;  %9645 = vmatpush3.bf16.msra.mxu0 %v10606_v35 }
 0x1ef   : > { %9515 = vmatprep.subr.bf16.mxu1 %v10948_v16  ;;  %9647 = vmatprep.subr.bf16.mxu0 %v10615_v38 }
 0x1f1   : > { %2085 = vmatmul.mubr.f32.vlgmr.msra.gmra.mrb[2].mxu1 %v11046_v12 }
 0x1f2   : > { %9517 = vmatpush3.bf16.msra.mxu1 %v11246_v32  ;;  %2220 = vmatprep.mubr.f32.mxu1 %v11076_v15  ;;  %v11277_v15 = vpack.c.bf16 %v11055_v25, %v11043_v47 }
 0x1f3   : > { %9519 = vmatprep.subr.bf16.mxu1 %v11252_v22  ;;  %9649 = vmatpush3.bf16.msra.mxu0 %v10645_v45 }
 0x1f4   : > { %9651 = vmatprep.subr.bf16.mxu0 %v10653_v48  ;;  %12204 = vst [vmem:[#allocation42_spill] sm:$0xff] %v11277_v15 }
 0x1f6   : > { %9521 = vmatpush3.bf16.msra.mxu1 %v11260_v7 }
 0x1f7   : > { %9523 = vmatprep.subr.bf16.mxu1 %v11265_v36  ;;  %9653 = vmatpush3.bf16.msra.mxu0 %v10683_v55  ;;  %v11296_v36 = vpack.c.bf16 %v11135_v60, %v11130_v59 }
 0x1f8   : > { %9655 = vmatprep.subr.bf16.mxu0 %v10691_v58 }
 0x1f9   : > { %12207 = vst [vmem:[#allocation45_spill] sm:$0xff] %v11296_v36 }
 0x1fa   : > { %9525 = vmatpush3.bf16.msra.mxu1 %v11272_v61  ;;  %v11301_v61 = vpack.c.bf16 %v11147_v0, %v11142_v54 }
 0x1fb   : > { %9527 = vmatprep.subr.bf16.mxu1 %v11277_v15  ;;  %9657 = vmatpush3.bf16.msra.mxu0 %v10724_v4  ;;  %v11308_v15 = vpack.c.bf16 %v11171_v23, %v11166_v53 }
 0x1fc   : > { %9659 = vmatprep.subr.bf16.mxu0 %v10733_v8  ;;  %12208 = vst [vmem:[#allocation46_spill] sm:$0xff] %v11301_v61  ;;  %v12215_v8 = vld [vmem:[#allocation20_spill] sm:$0xff] }
 0x1fd   : > { %12209 = vst [vmem:[#allocation47_spill] sm:$0xff] %v11308_v15 }
 0x1fe   : > { %9529 = vmatpush3.bf16.msra.mxu1 %v11284_v13  ;;  %v12211_v13 = vld [vmem:[#allocation30_spill] sm:$0xff] }
 0x1ff   : > { %9531 = vmatprep.subr.bf16.mxu1 %v11289_v10  ;;  %9661 = vmatpush3.bf16.msra.mxu0 %v10770_v18  ;;  %v12210_v10 = vld [vmem:[#allocation29_spill] sm:$0xff] }
 0x200   : > { %9663 = vmatprep.subr.bf16.mxu0 %v10778_v63  ;;  %v12213_v63 = vld [vmem:[#allocation19_spill] sm:$0xff] }
 0x201   : > { %v12214_v18 = vand.u32 4294901760, %v12213_v63  ;;  %v12222_v63 = vand.u32 4294901760, %v10983_v20  ;;  %v12229_v20 = vand.u32 4294901760, %v11011_v29  ;;  %v12239_v29 = vand.u32 4294901760, %v11093_v31 }
 0x202   : > { %9533 = vmatpush3.bf16.msra.mxu1 %v11296_v36  ;;  %v12212_v36 = vld [vmem:[#allocation31_spill] sm:$0xff]  ;;  %v12247_v31 = vand.u32 4294901760, %v11142_v54  ;;  %v12258_v54 = vld [vmem:[#allocation25_spill] sm:$0xff] }
 0x203   : > { %9535 = vmatprep.subr.bf16.mxu1 %v11301_v61  ;;  %9665 = vmatpush3.bf16.msra.mxu0 %v12193_v26  ;;  %v12216_v61 = vand.u32 4294901760, %v12215_v8  ;;  %v12223_v8 = vand.u32 4294901760, %v10988_v24  ;;  %v12230_v24 = vand.u32 4294901760, %v11016_v51  ;;  %v12238_v51 = vand.u32 4294901760, %v11088_v56 }
 0x204   : > { %9667 = vmatprep.subr.bf16.mxu0 %v12194_v19  ;;  %v12248_v56 = vand.u32 4294901760, %v11147_v0  ;;  %v12259_v0 = vand.u32 4294901760, %v12258_v54 }
 0x205   : > { %v11323_v4 = vpack.c.bf16 %v12216_v61, %v12214_v18  ;;  %v11339_v18 = vpack.c.bf16 %v12223_v8, %v12222_v63  ;;  %v12225_v61 = vld [vmem:[#allocation37_spill] sm:$0xff]  ;;  %v12232_v63 = vand.u32 4294901760, %v11030_v40  ;;  %v12242_v40 = vand.u32 4294901760, %v11107_v41 }
 0x206   : > { %9537 = vmatpush3.bf16.msra.mxu1 %v11308_v15  ;;  %v12218_v15 = vld [vmem:[#allocation32_spill] sm:$0xff]  ;;  %v12250_v41 = vand.u32 4294901760, %v11166_v53 }
 0x207   : > { %9539 = vmatprep.subr.bf16.mxu1 %v12210_v10  ;;  %9669 = vmatpush3.bf16.msra.mxu0 %v12195_v11  ;;  %12217 = vst [vmem:[#allocation19_spill] sm:$0xff] %v11323_v4  ;;  %v12219_v10 = vand.u32 4294901760, %v10971_v57  ;;  %12224 = vst [vmem:[#allocation48_spill] sm:$0xff] %v11339_v18  ;;  %v12226_v57 = vand.u32 4294901760, %v11000_v27  ;;  %v12235_v27 = vand.u32 4294901760, %v11043_v47  ;;  %v12244_v47 = vand.u32 4294901760, %v11130_v59 }
 0x208   : > { %9671 = vmatprep.subr.bf16.mxu0 %v12196_v21  ;;  %v12220_v21 = vand.u32 4294901760, %v10976_v34  ;;  %v12227_v34 = vand.u32 4294901760, %v11005_v28  ;;  %v12236_v28 = vand.u32 4294901760, %v11055_v25  ;;  %v12245_v25 = vand.u32 4294901760, %v11135_v60  ;;  %v12253_v59 = vld [vmem:[#allocation23_spill] sm:$0xff] }
 0x209   : > { %v12254_v60 = vand.u32 4294901760, %v12253_v59 }
 0x20a   : > { %9541 = vmatpush3.bf16.msra.mxu1 %v12211_v13  ;;  %v11332_v11 = vpack.c.bf16 %v12220_v21, %v12219_v10  ;;  %v11348_v10 = vpack.c.bf16 %v12227_v34, %v12226_v57  ;;  %v11355_v21 = vpack.c.bf16 %v12230_v24, %v12229_v20  ;;  %v11376_v57 = vpack.c.bf16 %v12239_v29, %v12238_v51  ;;  %v12260_v51 = vld [vmem:[#allocation26_spill] sm:$0xff] }
 0x20b   : > { %9543 = vmatprep.subr.bf16.mxu1 %v12212_v36  ;;  %9673 = vmatpush3.bf16.msra.mxu0 %v12197_v3  ;;  %v11390_v20 = vpack.c.bf16 %v12245_v25, %v12244_v47  ;;  %v11397_v24 = vpack.c.bf16 %v12248_v56, %v12247_v31  ;;  %v12261_v53 = vand.u32 4294901760, %v12260_v51  ;;  %v291_v47 = vld [vmem:[%s11967_s5 + $0x8] sm:$0xff]  ;;  %v290_v25 = vld [vmem:[%s11967_s5] sm:$0xff] }
 0x20c   : > { %9707 = vmatprep.subr.bf16.mxu0 %v10948_v16  ;;  %12221 = vst [vmem:[#allocation20_spill] sm:$0xff] %v11332_v11  ;;  %12228 = vst [vmem:[#allocation37_spill] sm:$0xff] %v11348_v10  ;;  %v11432_v31 = vand.u32 4294901760, %v291_v47  ;;  %v11434_v56 = vand.u32 4294901760, %v290_v25 }
 0x20d   : > { %12231 = vst [vmem:[#allocation49_spill] sm:$0xff] %v11355_v21  ;;  %12240 = vst [vmem:[#allocation52_spill] sm:$0xff] %v11376_v57  ;;  %v11419_v29 = vpack.c.bf16 %v12261_v53, %v12259_v0 }
 0x20e   : > { %9545 = vmatpush3.bf16.msra.mxu1 %v12218_v15  ;;  %12246 = vst [vmem:[#allocation54_spill] sm:$0xff] %v11390_v20  ;;  %12249 = vst [vmem:[#allocation55_spill] sm:$0xff] %v11397_v24 }
 0x20f   : > { %9579 = vmatprep.subr.bf16.mxu1 %v11323_v4 }
 0x211   : > { %2223 = vmatmul.mubr.f32.vlgmr.msra.gmra.mrb[4].mxu1 %v12225_v61  ;;  %v11369_v61 = vpack.c.bf16 %v12236_v28, %v12235_v27 }
 0x212   : > { %9581 = vmatpush3.bf16.msra.mxu1 %v11332_v11  ;;  %2497 = vmatprep.mubr.f32.mxu1 %v11058_v44  ;;  %v12233_v44 = vand.u32 4294901760, %v11038_v5  ;;  %v12241_v5 = vand.u32 4294901760, %v11099_v52  ;;  %v12251_v52 = vand.u32 4294901760, %v11171_v23  ;;  %v12263_v23 = vld [vmem:[#allocation33_spill] sm:$0xff] }
 0x213   : > { %9583 = vmatprep.subr.bf16.mxu1 %v11339_v18  ;;  %12237 = vst [vmem:[#allocation51_spill] sm:$0xff] %v11369_v61 }
 0x214   : > { %v11362_v8 = vpack.c.bf16 %v12233_v44, %v12232_v63  ;;  %v11383_v34 = vpack.c.bf16 %v12242_v40, %v12241_v5  ;;  %v11404_v63 = vpack.c.bf16 %v12251_v52, %v12250_v41  ;;  %v12255_v44 = vld [vmem:[#allocation24_spill] sm:$0xff]  ;;  %v12264_v5 = vld [vmem:[#allocation34_spill] sm:$0xff]  ;;  %v12265_v40 = vmov 0.0  }
 0x215   : > { %v12256_v27 = vand.u32 4294901760, %v12255_v44  ;;  %12262 = vst [vmem:[#allocation24_spill] sm:$0xff] %v11419_v29 }
 0x216   : > { %9585 = vmatpush3.bf16.msra.mxu1 %v11348_v10  ;;  %12234 = vst [vmem:[#allocation50_spill] sm:$0xff] %v11362_v8  ;;  %12243 = vst [vmem:[#allocation53_spill] sm:$0xff] %v11383_v34 }
 0x217   : > { %9587 = vmatprep.subr.bf16.mxu1 %v11355_v21  ;;  %12252 = vst [vmem:[#allocation56_spill] sm:$0xff] %v11404_v63  ;;  %v11411_v28 = vpack.c.bf16 %v12256_v27, %v12254_v60 }
 0x219   : > { %12257 = vst [vmem:[#allocation23_spill] sm:$0xff] %v11411_v28 }
 0x21a   : > { %9589 = vmatpush3.bf16.msra.mxu1 %v11362_v8 }
 0x21b   : > { %9591 = vmatprep.subr.bf16.mxu1 %v11369_v61 }
 0x21e   : > { %9593 = vmatpush3.bf16.msra.mxu1 %v11376_v57 }
 0x21f   : > { %9595 = vmatprep.subr.bf16.mxu1 %v11383_v34 }
 0x222   : > { %9597 = vmatpush3.bf16.msra.mxu1 %v11390_v20 }
 0x223   : > { %9599 = vmatprep.subr.bf16.mxu1 %v11397_v24 }
 0x226   : > { %9601 = vmatpush3.bf16.msra.mxu1 %v11404_v63 }
 0x227   : > { %9603 = vmatprep.subr.bf16.mxu1 %v11411_v28 }
 0x22a   : > { %9605 = vmatpush3.bf16.msra.mxu1 %v12263_v23 }
 0x22b   : > { %9607 = vmatprep.subr.bf16.mxu1 %v11419_v29 }
 0x22e   : > { %9609 = vmatpush3.bf16.msra.mxu1 %v12264_v5 }
 0x22f   : > { %2613 = vmatprep.subr.mxu1 %v11432_v31 }
 0x231   : > { %2499 = vmatmul.mubr.f32.vlgmr.msra.gmra.mrb[6].mxu1 %v11046_v12  ;;  %v11439_v12 = vsub.f32 %v291_v47, %v11432_v31 }
 0x232   : > { %2678 = vmatprep.mubr.f32.mxu1 %v12265_v40  ;;  %2615 = vmatpush1.msra.mxu1 %v11434_v56 }
 0x233   : > { %v11442_v41 = vand.u32 4294901760, %v11439_v12 }
 0x235   : > { %v2693_v52 = vsub.f32 %v11439_v12, %v11442_v41 }
 0x237   : > { %v11446_v59 = vand.u32 4294901760, %v2693_v52 }
 0x239   : > { %12266 = vst [vmem:[#allocation25_spill] sm:$0xff] %v11446_v59  ;;  %2695 = vmatprep.subr.mxu1 %v11446_v59 }
 0x2a0   : > { %v8747_v60 = vpop.f32.mrb[2].mxu0 }
 0x2a1   : > { %v8748_v44 = vpop.f32.mrb[3].mxu0 }
 0x2a2   : > { %v8749_v27 = vadd.f32 %v8748_v44, %v8747_v60  ;;  %v11450_v44 = vsub.f32 %v290_v25, %v11434_v56 }
 0x2a4   : > { %v8642_v54 = vpop.f32.mrb[0].mxu1 }
 0x2a5   : > { %v8643_v0 = vpop.f32.mrb[1].mxu1 }
 0x2a6   : > { %v8644_v51 = vadd.f32 %v8643_v0, %v8642_v54  ;;  %v11454_v0 = vand.u32 4294901760, %v11450_v44 }
 0x2c0   : > { %v8817_v53 = vpop.f32.mrb[4].mxu0 }
 0x2c1   : > { %v8818_v16 = vpop.f32.mrb[5].mxu0 }
 0x2c2   : > { %v8819_v47 = vadd.f32 %v8818_v16, %v8817_v53 }
 0x2c4   : > { %v8677_v5 = vpop.f32.mrb[2].mxu1 }
 0x2c5   : > { %v8678_v29 = vpop.f32.mrb[3].mxu1 }
 0x2c6   : > { %v8679_v23 = vadd.f32 %v8678_v29, %v8677_v5 }
 0x2c8   : > { %v2087_v28 = vadd.f32 %v8679_v23, %v8644_v51 }
 0x2e4   : > { %v8712_v63 = vpop.f32.mrb[4].mxu1 }
 0x2e5   : > { %v8713_v24 = vpop.f32.mrb[5].mxu1 }
 0x2e6   : > { %v8714_v20 = vadd.f32 %v8713_v24, %v8712_v63 }
 0x2e8   : > { %v2225_v52 = vadd.f32 %v8714_v20, %v2087_v28  ;;  %v2699_v20 = vsub.f32 %v11450_v44, %v11454_v0 }
 0x2ea   : > { %v2333_v34 = vadd.f32 %v8749_v27, %v2225_v52  ;;  %v11458_v28 = vand.u32 4294901760, %v2699_v20 }
 0x304   : > { %v8782_v57 = vpop.f32.mrb[6].mxu1 }
 0x305   : > { %v8783_v59 = vpop.f32.mrb[7].mxu1 }
 0x306   : > { %v8784_v61 = vadd.f32 %v8783_v59, %v8782_v57  ;;  %v12269_v59 = vld [vmem:[#allocation36_spill] sm:$0xff] }
 0x308   : > { %v2501_v8 = vadd.f32 %v8784_v61, %v2333_v34  ;;  %v12268_v34 = vld [vmem:[#allocation35_spill] sm:$0xff] }
 0x30a   : > { %v2605_v60 = vadd.f32 %v8819_v47, %v2501_v8  ;;  %v12267_v8 = vld [vmem:[#allocation22_spill] sm:$0xff] }
 0x30c   : > { %v2608_v54 = vmul.f32 0.0625, %v2605_v60 }
 0x30e   : > { %v2610_v16 = vsel %vm337_vm0, %v2608_v54, 0 }
 0x30f   : > { %v2679_v29 = vand.u32 4294901760, %v2610_v16 }
 0x311   : > { %v2680_v23 = vsub.f32 %v2610_v16, %v2679_v29 }
 0x313   : > { %v2681_v24 = vand.u32 4294901760, %v2680_v23 }
 0x315   : > { %v2682_v63 = vsub.f32 %v2680_v23, %v2681_v24 }
 0x317   : > { %v2683_v61 = vand.u32 4294901760, %v2682_v63 }
 0x319   : > { %2684 = vmatmul.mubr.f32.vlgmr.msra.gmra.mrb[8].mxu1 %v2683_v61  ;;  %v12270_v61 = vld [vmem:[#allocation6_spill] sm:$0xff] }
 0x31a   : > { %2701 = vmatpush1.msra.mxu1 %v11458_v28  ;;  %2764 = vmatprep.mubr.f32.mxu1 %v12265_v40 }
 0x31b   : > { %2774 = vmatprep.subr.mxu1 %v11439_v12 }
 0x321   : > { %2766 = vmatmul.mubr.f32.vlgmr.msra.gmra.mrb[8].mxu1 %v2679_v29 }
 0x322   : > { %2777 = vmatpush1.msra.mxu1 %v11450_v44  ;;  %2840 = vmatprep.mubr.f32.mxu1 %v12265_v40 }
 0x323   : > { %2850 = vmatprep.subr.mxu1 %v11432_v31 }
 0x329   : > { %2843 = vmatmul.mubr.f32.vlgmr.msra.gmra.mrb[8].mxu1 %v2680_v23 }
 0x32a   : > { %2852 = vmatpush1.msra.mxu1 %v11434_v56  ;;  %2915 = vmatprep.mubr.f32.mxu1 %v12265_v40 }
 0x32b   : > { %2928 = vmatprep.subr.mxu1 %v11442_v41 }
 0x331   : > { %2919 = vmatmul.mubr.f32.vlgmr.msra.gmra.mrb[8].mxu1 %v2681_v24 }
 0x332   : > { %2932 = vmatpush1.msra.mxu1 %v11454_v0  ;;  %2995 = vmatprep.mubr.f32.mxu1 %v12265_v40 }
 0x333   : > { %3004 = vmatprep.subr.mxu1 %v11432_v31 }
 0x339   : > { %2997 = vmatmul.mubr.f32.vlgmr.msra.gmra.mrb[8].mxu1 %v2679_v29 }
 0x33a   : > { %3006 = vmatpush1.msra.mxu1 %v11434_v56  ;;  %3069 = vmatprep.mubr.f32.mxu1 %v12265_v40 }
 0x33b   : > { %9675 = vmatprep.subr.bf16.mxu1 %v12267_v8 }
 0x341   : > { %3071 = vmatmul.mubr.f32.vlgmr.msra.gmra.mrb[8].mxu1 %v2679_v29 }
 0x342   : > { %9677 = vmatpush3.bf16.msra.mxu1 %v11050_v43 }
 0x343   : > { %9679 = vmatprep.subr.bf16.mxu1 %v11102_v46 }
 0x346   : > { %9681 = vmatpush3.bf16.msra.mxu1 %v11149_v39 }
 0x347   : > { %9683 = vmatprep.subr.bf16.mxu1 %v11151_v2 }
 0x34a   : > { %9685 = vmatpush3.bf16.msra.mxu1 %v11184_v14 }
 0x34b   : > { %9687 = vmatprep.subr.bf16.mxu1 %v11186_v50 }
 0x34e   : > { %9689 = vmatpush3.bf16.msra.mxu1 %v11206_v9 }
 0x34f   : > { %9691 = vmatprep.subr.bf16.mxu1 %v11218_v42 }
 0x352   : > { %9693 = vmatpush3.bf16.msra.mxu1 %v11222_v37 }
 0x353   : > { %9695 = vmatprep.subr.bf16.mxu1 %v11226_v62 }
 0x356   : > { %9697 = vmatpush3.bf16.msra.mxu1 %v11230_v33 }
 0x357   : > { %9699 = vmatprep.subr.bf16.mxu1 %v10937_v6 }
 0x35a   : > { %9701 = vmatpush3.bf16.msra.mxu1 %v10942_v30 }
 0x35b   : > { %9703 = vmatprep.subr.bf16.mxu1 %v10944_v17 }
 0x35e   : > { %9705 = vmatpush3.bf16.msra.mxu1 %v10950_v1 }
 0x35f   : > { %9739 = vmatprep.subr.bf16.mxu1 %v12198_v49 }
 0x414   : > { %v3072_v57 = vpop.f32.mrb[8].mxu1 }
 0x415   : > { %v11492_v5 = vsub.f32 %v12268_v34, %v3072_v57  ;;  %v3074_v25 = vpop.f32.mrb[9].mxu1  ;;  %v12271_v57 = vld [vmem:[#allocation40_spill] sm:$0xff]  ;;  %v12272_v34 = vld [vmem:[#allocation7_spill] sm:$0xff] }
 0x416   : > { %v11495_v27 = vsub.f32 %v12269_v59, %v3074_v25  ;;  %v12273_v25 = vld [vmem:[#allocation41_spill] sm:$0xff]  ;;  %v12274_v59 = vld [vmem:[#allocation8_spill] sm:$0xff] }
 0x417   : > { %v3079_v51 = vmul.f32 %v11492_v5, %v11492_v5 }
 0x418   : > { %v3080_v53 = vmul.f32 %v11495_v27, %v11495_v27 }
 0x419   : > { %v11501_v47 = vand.u32 4294901760, %v3079_v51 }
 0x41a   : > { %v3177_v52 = vand.u32 4294901760, %v3080_v53 }
 0x41b   : > { %v3184_v60 = vsub.f32 %v3079_v51, %v11501_v47  ;;  %v12275_v51 = vld [vmem:[#allocation42_spill] sm:$0xff] }
 0x41c   : > { %v3178_v54 = vsub.f32 %v3080_v53, %v3177_v52  ;;  %3418 = vmatprep.mubr.f32.mxu1 %v3177_v52  ;;  %v12276_v53 = vld [vmem:[#allocation9_spill] sm:$0xff] }
 0x41d   : > { %v3185_v16 = vand.u32 4294901760, %v3184_v60  ;;  %3420 = vmatmul.mubr.f32.vlgmr.msra.gmra.mrb[10].mxu1 %v11501_v47 }
 0x41e   : > { %9741 = vmatpush3.bf16.msra.mxu1 %v10606_v35  ;;  %v3179_v29 = vand.u32 4294901760, %v3178_v54 }
 0x41f   : > { %9743 = vmatprep.subr.bf16.mxu1 %v10615_v38  ;;  %v3186_v23 = vsub.f32 %v3184_v60, %v3185_v16 }
 0x420   : > { %3662 = vmatprep.mubr.f32.mxu1 %v3179_v29  ;;  %v3180_v20 = vsub.f32 %v3178_v54, %v3179_v29  ;;  %v12278_v29 = vld [vmem:[#allocation44_spill] sm:$0xff] }
 0x421   : > { %v3187_v63 = vand.u32 4294901760, %v3186_v23  ;;  %v12279_v23 = vld [vmem:[#allocation45_spill] sm:$0xff] }
 0x422   : > { %9745 = vmatpush3.bf16.msra.mxu1 %v10645_v45  ;;  %v3181_v24 = vand.u32 4294901760, %v3180_v20  ;;  %v12280_v20 = vld [vmem:[#allocation17_spill] sm:$0xff] }
 0x423   : > { %9747 = vmatprep.subr.bf16.mxu1 %v10653_v48 }
 0x424   : > { %3182 = vmatprep.mubr.f32.mxu0 %v3181_v24  ;;  %v12281_v24 = vld [vmem:[#allocation46_spill] sm:$0xff] }
 0x425   : > { %3188 = vmatmul.mubr.f32.vlgmr.msra.gmra.mrb[6].mxu0 %v3187_v63  ;;  %v12282_v63 = vld [vmem:[#allocation18_spill] sm:$0xff] }
 0x426   : > { %9709 = vmatpush3.bf16.msra.mxu0 %v11246_v32  ;;  %9749 = vmatpush3.bf16.msra.mxu1 %v10683_v55 }
 0x427   : > { %3555 = vmatprep.mubr.f32.mxu0 %v3178_v54  ;;  %9711 = vmatprep.subr.bf16.mxu0 %v11252_v22  ;;  %v12277_v54 = vld [vmem:[#allocation43_spill] sm:$0xff] }
 0x428   : > { %9751 = vmatprep.subr.bf16.mxu1 %v10691_v58 }
 0x42a   : > { %9713 = vmatpush3.bf16.msra.mxu0 %v11260_v7  ;;  %9753 = vmatpush3.bf16.msra.mxu1 %v12270_v61 }
 0x42b   : > { %9715 = vmatprep.subr.bf16.mxu0 %v12271_v57  ;;  %9755 = vmatprep.subr.bf16.mxu1 %v12272_v34 }
 0x42e   : > { %9717 = vmatpush3.bf16.msra.mxu0 %v12273_v25  ;;  %9757 = vmatpush3.bf16.msra.mxu1 %v12274_v59  ;;  %v12283_v25 = vld [vmem:[#allocation47_spill] sm:$0xff] }
 0x42f   : > { %9719 = vmatprep.subr.bf16.mxu0 %v12275_v51  ;;  %9759 = vmatprep.subr.bf16.mxu1 %v12276_v53  ;;  %v12284_v51 = vld [vmem:[#allocation29_spill] sm:$0xff] }
 0x432   : > { %9721 = vmatpush3.bf16.msra.mxu0 %v12277_v54  ;;  %9761 = vmatpush3.bf16.msra.mxu1 %v12193_v26 }
 0x433   : > { %9723 = vmatprep.subr.bf16.mxu0 %v12278_v29  ;;  %9763 = vmatprep.subr.bf16.mxu1 %v12194_v19 }
 0x436   : > { %9725 = vmatpush3.bf16.msra.mxu0 %v12279_v23  ;;  %9765 = vmatpush3.bf16.msra.mxu1 %v12280_v20 }
 0x437   : > { %9727 = vmatprep.subr.bf16.mxu0 %v12281_v24  ;;  %9767 = vmatprep.subr.bf16.mxu1 %v12282_v63 }
 0x43a   : > { %9729 = vmatpush3.bf16.msra.mxu0 %v12283_v25  ;;  %9769 = vmatpush3.bf16.msra.mxu1 %v12197_v3 }
 0x43b   : > { %9731 = vmatprep.subr.bf16.mxu0 %v12284_v51  ;;  %9803 = vmatprep.subr.bf16.mxu1 %v12198_v49 }
 0x43d   : > { %3666 = vmatmul.mubr.f32.vlgmr.msra.gmra.mrb[12].mxu1 %v3185_v16  ;;  %v12285_v16 = vld [vmem:[#allocation50_spill] sm:$0xff] }
 0x43e   : > { %9733 = vmatpush3.bf16.msra.mxu0 %v12211_v13  ;;  %9805 = vmatpush3.bf16.msra.mxu1 %v10606_v35 }
 0x43f   : > { %3936 = vmatprep.mubr.f32.mxu1 %v3177_v52  ;;  %9735 = vmatprep.subr.bf16.mxu0 %v12212_v36 }
 0x440   : > { %9807 = vmatprep.subr.bf16.mxu1 %v10615_v38 }
 0x442   : > { %9737 = vmatpush3.bf16.msra.mxu0 %v12218_v15  ;;  %9809 = vmatpush3.bf16.msra.mxu1 %v10645_v45 }
 0x443   : > { %9771 = vmatprep.subr.bf16.mxu0 %v11323_v4  ;;  %9811 = vmatprep.subr.bf16.mxu1 %v10653_v48 }
 0x445   : > { %3558 = vmatmul.mubr.f32.vlgmr.msra.gmra.mrb[8].mxu0 %v3184_v60  ;;  %v12286_v60 = vld [vmem:[#allocation51_spill] sm:$0xff] }
 0x446   : > { %9773 = vmatpush3.bf16.msra.mxu0 %v11332_v11  ;;  %3832 = vmatprep.mubr.f32.mxu0 %v3177_v52  ;;  %v12287_v52 = vld [vmem:[#allocation52_spill] sm:$0xff] }
 0x447   : > { %9813 = vmatpush3.bf16.msra.mxu1 %v10683_v55  ;;  %9775 = vmatprep.subr.bf16.mxu0 %v11339_v18  ;;  %v12288_v18 = vld [vmem:[#allocation53_spill] sm:$0xff] }
 0x448   : > { %9815 = vmatprep.subr.bf16.mxu1 %v10691_v58 }
 0x44a   : > { %9777 = vmatpush3.bf16.msra.mxu0 %v11348_v10  ;;  %v12289_v10 = vld [vmem:[#allocation54_spill] sm:$0xff] }
 0x44b   : > { %9817 = vmatpush3.bf16.msra.mxu1 %v12270_v61  ;;  %9779 = vmatprep.subr.bf16.mxu0 %v11355_v21  ;;  %v12290_v21 = vld [vmem:[#allocation55_spill] sm:$0xff] }
 0x44c   : > { %9819 = vmatprep.subr.bf16.mxu1 %v12272_v34 }
 0x44e   : > { %9781 = vmatpush3.bf16.msra.mxu0 %v12285_v16  ;;  %v12291_v16 = vld [vmem:[#allocation56_spill] sm:$0xff] }
 0x44f   : > { %9821 = vmatpush3.bf16.msra.mxu1 %v12274_v59  ;;  %9783 = vmatprep.subr.bf16.mxu0 %v12286_v60  ;;  %v12292_v60 = vld [vmem:[#allocation23_spill] sm:$0xff] }
 0x450   : > { %9823 = vmatprep.subr.bf16.mxu1 %v12276_v53 }
 0x452   : > { %9785 = vmatpush3.bf16.msra.mxu0 %v12287_v52  ;;  %v12293_v52 = vld [vmem:[#allocation33_spill] sm:$0xff] }
 0x453   : > { %9825 = vmatpush3.bf16.msra.mxu1 %v12193_v26  ;;  %9787 = vmatprep.subr.bf16.mxu0 %v12288_v18  ;;  %v12294_v18 = vld [vmem:[#allocation24_spill] sm:$0xff] }
 0x454   : > { %9827 = vmatprep.subr.bf16.mxu1 %v12194_v19 }
 0x456   : > { %9789 = vmatpush3.bf16.msra.mxu0 %v12289_v10  ;;  %v12295_v10 = vld [vmem:[#allocation34_spill] sm:$0xff] }
 0x457   : > { %9829 = vmatpush3.bf16.msra.mxu1 %v12280_v20  ;;  %9791 = vmatprep.subr.bf16.mxu0 %v12290_v21 }
 0x458   : > { %9831 = vmatprep.subr.bf16.mxu1 %v12282_v63 }
 0x45a   : > { %9793 = vmatpush3.bf16.msra.mxu0 %v12291_v16  ;;  %v12296_v16 = vld [vmem:[#allocation25_spill] sm:$0xff] }
 0x45b   : > { %9833 = vmatpush3.bf16.msra.mxu1 %v12197_v3  ;;  %9795 = vmatprep.subr.bf16.mxu0 %v12292_v60 }
 0x45e   : > { %3938 = vmatmul.mubr.f32.vlgmr.msra.gmra.mrb[14].mxu1 %v11501_v47  ;;  %9797 = vmatpush3.bf16.msra.mxu0 %v12293_v52 }
 0x45f   : > { %9799 = vmatprep.subr.bf16.mxu0 %v12294_v18  ;;  %4506 = vmatprep.mubr.f32.mxu1 %v12265_v40 }
 0x462   : > { %9801 = vmatpush3.bf16.msra.mxu0 %v12295_v10 }
 0x463   : > { %3950 = vmatprep.subr.mxu0 %v11432_v31 }
 0x465   : > { %3834 = vmatmul.mubr.f32.vlgmr.msra.gmra.mrb[10].mxu0 %v11501_v47 }
 0x466   : > { %3952 = vmatpush1.msra.mxu0 %v11434_v56  ;;  %4015 = vmatprep.mubr.f32.mxu0 %v12265_v40 }
 0x467   : > { %4032 = vmatprep.subr.mxu0 %v12296_v16 }
 0x4f0   : > { %v8887_v60 = vpop.f32.mrb[10].mxu1 }
 0x4f1   : > { %v8888_v21 = vpop.f32.mrb[11].mxu1 }
 0x4f2   : > { %v8889_v11 = vadd.f32 %v8888_v21, %v8887_v60 }
 0x4f8   : > { %v8852_v52 = vpop.f32.mrb[6].mxu0 }
 0x4f9   : > { %v8853_v4 = vpop.f32.mrb[7].mxu0 }
 0x4fa   : > { %v8854_v18 = vadd.f32 %v8853_v4, %v8852_v52 }
 0x4fc   : > { %v3422_v15 = vadd.f32 %v8889_v11, %v8854_v18 }
 0x510   : > { %v8957_v36 = vpop.f32.mrb[12].mxu1 }
 0x511   : > { %v8958_v13 = vpop.f32.mrb[13].mxu1 }
 0x512   : > { %v8959_v10 = vadd.f32 %v8958_v13, %v8957_v36 }
 0x518   : > { %v8922_v51 = vpop.f32.mrb[8].mxu0 }
 0x519   : > { %v8923_v25 = vpop.f32.mrb[9].mxu0 }
 0x51a   : > { %v8924_v24 = vadd.f32 %v8923_v25, %v8922_v51 }
 0x51c   : > { %v3560_v47 = vadd.f32 %v8924_v24, %v3422_v15 }
 0x51e   : > { %v3668_v23 = vadd.f32 %v8959_v10, %v3560_v47 }
 0x531   : > { %v9027_v29 = vpop.f32.mrb[14].mxu1 }
 0x532   : > { %v9028_v54 = vpop.f32.mrb[15].mxu1 }
 0x533   : > { %v9029_v57 = vadd.f32 %v9028_v54, %v9027_v29 }
 0x538   : > { %v8992_v7 = vpop.f32.mrb[10].mxu0 }
 0x539   : > { %v8993_v16 = vpop.f32.mrb[11].mxu0 }
 0x53a   : > { %v8994_v22 = vadd.f32 %v8993_v16, %v8992_v7 }
 0x53c   : > { %v3836_v32 = vadd.f32 %v8994_v22, %v3668_v23 }
 0x53e   : > { %v3940_v21 = vadd.f32 %v9029_v57, %v3836_v32 }
 0x540   : > { %v3943_v60 = vmul.f32 0.0625, %v3940_v21 }
 0x542   : > { %v3944_v1 = vadd.f32 1e-05, %v3943_v60 }
 0x544   : > { %10369 = vrsqrt.f32 %v3944_v1  ;;  %v8602_v1 = vld [vmem:[%s11964_s2 + $0x8] sm:$0xff] }
 0x545   : > { %v4438_v32 = vsel %vm337_vm0, %v8602_v1, 0 }
 0x546   : > { %v4507_v22 = vand.u32 4294901760, %v4438_v32 }
 0x548   : > { %v4508_v7 = vsub.f32 %v4438_v32, %v4507_v22 }
 0x54a   : > { %v4509_v10 = vand.u32 4294901760, %v4508_v7 }
 0x54c   : > { %v4510_v23 = vsub.f32 %v4508_v7, %v4509_v10 }
 0x54e   : > { %v10370_v4 = vpop.eup %10369  ;;  %v4511_v21 = vand.u32 4294901760, %v4510_v23  ;;  %v8603_v23 = vld [vmem:[%s11964_s2 + $0x10] sm:$0xff] }
 0x54f   : > { %v3947_v11 = vsel %vm337_vm0, %v10370_v4, 0 }
 0x550   : > { %v4016_v13 = vand.u32 4294901760, %v3947_v11 }
 0x552   : > { %v4017_v36 = vsub.f32 %v3947_v11, %v4016_v13 }
 0x554   : > { %v4018_v18 = vand.u32 4294901760, %v4017_v36 }
 0x556   : > { %v4019_v25 = vsub.f32 %v4017_v36, %v4018_v18 }
 0x558   : > { %v4020_v15 = vand.u32 4294901760, %v4019_v25  ;;  %v4434_v25 = vld [vmem:[%s11964_s2] sm:$0xff] }
 0x55a   : > { %4021 = vmatmul.mubr.f32.vlgmr.msra.gmra.mrb[12].mxu0 %v4020_v15  ;;  %v4906_v15 = vsel %vm337_vm0, %v4434_v25, 0 }
 0x55b   : > { %4038 = vmatpush1.msra.mxu0 %v11458_v28  ;;  %4101 = vmatprep.mubr.f32.mxu0 %v12265_v40  ;;  %v4975_v1 = vand.u32 4294901760, %v4906_v15 }
 0x55c   : > { %4111 = vmatprep.subr.mxu0 %v11439_v12 }
 0x55d   : > { %v4976_v32 = vsub.f32 %v4906_v15, %v4975_v1 }
 0x562   : > { %4103 = vmatmul.mubr.f32.vlgmr.msra.gmra.mrb[12].mxu0 %v4016_v13 }
 0x563   : > { %4114 = vmatpush1.msra.mxu0 %v11450_v44  ;;  %4177 = vmatprep.mubr.f32.mxu0 %v12265_v40 }
 0x564   : > { %4187 = vmatprep.subr.mxu0 %v11432_v31 }
 0x56a   : > { %4180 = vmatmul.mubr.f32.vlgmr.msra.gmra.mrb[12].mxu0 %v4017_v36 }
 0x56b   : > { %4189 = vmatpush1.msra.mxu0 %v11434_v56  ;;  %4252 = vmatprep.mubr.f32.mxu0 %v12265_v40 }
 0x56c   : > { %4265 = vmatprep.subr.mxu0 %v11442_v41 }
 0x572   : > { %4256 = vmatmul.mubr.f32.vlgmr.msra.gmra.mrb[12].mxu0 %v4018_v18 }
 0x573   : > { %4269 = vmatpush1.msra.mxu0 %v11454_v0  ;;  %4332 = vmatprep.mubr.f32.mxu0 %v12265_v40 }
 0x574   : > { %4341 = vmatprep.subr.mxu0 %v11432_v31 }
 0x57a   : > { %4334 = vmatmul.mubr.f32.vlgmr.msra.gmra.mrb[12].mxu0 %v4016_v13 }
 0x57b   : > { %4343 = vmatpush1.msra.mxu0 %v11434_v56  ;;  %4406 = vmatprep.mubr.f32.mxu0 %v12265_v40 }
 0x57c   : > { %9835 = vmatprep.subr.bf16.mxu0 %v12198_v49 }
 0x582   : > { %4408 = vmatmul.mubr.f32.vlgmr.msra.gmra.mrb[12].mxu0 %v4016_v13 }
 0x583   : > { %9837 = vmatpush3.bf16.msra.mxu0 %v10606_v35 }
 0x584   : > { %9839 = vmatprep.subr.bf16.mxu0 %v10615_v38 }
 0x587   : > { %9841 = vmatpush3.bf16.msra.mxu0 %v10645_v45 }
 0x588   : > { %9843 = vmatprep.subr.bf16.mxu0 %v10653_v48 }
 0x58b   : > { %9845 = vmatpush3.bf16.msra.mxu0 %v10683_v55 }
 0x58c   : > { %9847 = vmatprep.subr.bf16.mxu0 %v10691_v58 }
 0x58f   : > { %9849 = vmatpush3.bf16.msra.mxu0 %v12270_v61 }
 0x590   : > { %9851 = vmatprep.subr.bf16.mxu0 %v12272_v34 }
 0x593   : > { %9853 = vmatpush3.bf16.msra.mxu0 %v12274_v59 }
 0x594   : > { %9855 = vmatprep.subr.bf16.mxu0 %v12276_v53 }
 0x597   : > { %9857 = vmatpush3.bf16.msra.mxu0 %v12193_v26 }
 0x598   : > { %9859 = vmatprep.subr.bf16.mxu0 %v12194_v19 }
 0x59b   : > { %9861 = vmatpush3.bf16.msra.mxu0 %v12280_v20 }
 0x59c   : > { %9863 = vmatprep.subr.bf16.mxu0 %v12282_v63 }
 0x59f   : > { %9865 = vmatpush3.bf16.msra.mxu0 %v12197_v3 }
 0x5a0   : > { %9867 = vmatprep.subr.bf16.mxu0 %v12267_v8 }
 0x655   : > { %v4409_v57 = vpop.f32.mrb[12].mxu0 }
 0x656   : > { %v4414_v51 = vmul.f32 %v4409_v57, %v11492_v5  ;;  %v4411_v54 = vpop.f32.mrb[13].mxu0 }
 0x657   : > { %v4415_v29 = vmul.f32 %v4411_v54, %v11495_v27 }
 0x658   : > { %v4416_v24 = vmax.f32 %v4414_v51, 0.0 }
 0x659   : > { %v4417_v16 = vmax.f32 %v4415_v29, 0.0 }
 0x65a   : > { %4418 = vrot.lane.b32.xlu0 %v4416_v24, %s10441_s17  ;;  %v4442_v52 = vand.u32 4294901760, %v4416_v24 }
 0x65b   : > { %4420 = vrot.lane.b32.xlu1 %v4417_v16, %s10441_s17  ;;  %v4440_v47 = vand.u32 4294901760, %v4417_v16 }
 0x65c   : > { %v4525_v60 = vsub.f32 %v4416_v24, %v4442_v52 }
 0x65d   : > { %4441 = vmatprep.subr.mxu1 %v4440_v47  ;;  %v4519_v4 = vsub.f32 %v4417_v16, %v4440_v47 }
 0x65e   : > { %4424 = vrot.lane.b32.xlu0 %v4416_v24, %s10440_s16  ;;  %4443 = vmatpush1.msra.mxu1 %v4442_v52  ;;  %v4526_v5 = vand.u32 4294901760, %v4525_v60 }
 0x65f   : > { %4426 = vrot.lane.b32.xlu1 %v4417_v16, %s10440_s16  ;;  %4512 = vmatmul.mubr.f32.vlgmr.msra.gmra.mrb[16].mxu1 %v4511_v21  ;;  %v4520_v27 = vand.u32 4294901760, %v4519_v4 }
 0x660   : > { %v4527_v11 = vsub.f32 %v4525_v60, %v4526_v5  ;;  %4592 = vmatprep.mubr.f32.mxu1 %v12265_v40 }
 0x661   : > { %v4521_v13 = vsub.f32 %v4519_v4, %v4520_v27 }
 0x662   : > { %v4528_v18 = vand.u32 4294901760, %v4527_v11 }
 0x663   : > { %v4522_v36 = vand.u32 4294901760, %v4521_v13 }
 0x665   : > { %4523 = vmatprep.subr.mxu1 %v4522_v36 }
 0x666   : > { %4529 = vmatpush1.msra.mxu1 %v4528_v18 }
 0x667   : > { %4594 = vmatmul.mubr.f32.vlgmr.msra.gmra.mrb[16].mxu1 %v4507_v22  ;;  %4602 = vmatprep.subr.mxu1 %v4519_v4 }
 0x668   : > { %4605 = vmatpush1.msra.mxu1 %v4525_v60  ;;  %4668 = vmatprep.mubr.f32.mxu1 %v12265_v40 }
 0x669   : > { %4678 = vmatprep.subr.mxu1 %v4440_v47 }
 0x66f   : > { %4671 = vmatmul.mubr.f32.vlgmr.msra.gmra.mrb[16].mxu1 %v4508_v7 }
 0x670   : > { %4680 = vmatpush1.msra.mxu1 %v4442_v52  ;;  %4743 = vmatprep.mubr.f32.mxu1 %v12265_v40 }
 0x671   : > { %4756 = vmatprep.subr.mxu1 %v4520_v27 }
 0x677   : > { %4747 = vmatmul.mubr.f32.vlgmr.msra.gmra.mrb[16].mxu1 %v4509_v10  ;;  %v4977_v10 = vand.u32 4294901760, %v4976_v32 }
 0x678   : > { %4760 = vmatpush1.msra.mxu1 %v4526_v5  ;;  %4823 = vmatprep.mubr.f32.mxu1 %v12265_v40 }
 0x679   : > { %4832 = vmatprep.subr.mxu1 %v4440_v47  ;;  %v4978_v54 = vsub.f32 %v4976_v32, %v4977_v10 }
 0x67b   : > { %v4979_v11 = vand.u32 4294901760, %v4978_v54 }
 0x67f   : > { %4825 = vmatmul.mubr.f32.vlgmr.msra.gmra.mrb[16].mxu1 %v4507_v22 }
 0x680   : > { %4834 = vmatpush1.msra.mxu1 %v4442_v52  ;;  %4897 = vmatprep.mubr.f32.mxu1 %v12265_v40 }
 0x687   : > { %4899 = vmatmul.mubr.f32.vlgmr.msra.gmra.mrb[16].mxu1 %v4507_v22 }
 0x688   : > { %4974 = vmatprep.mubr.f32.mxu1 %v12265_v40 }
 0x6cc   : > { %v4419_v7 = vpop.permute.xlu0 %4418 }
 0x6cd   : > { %v4421_v57 = vpop.permute.xlu1 %4420 }
 0x6ce   : > { %v4422_v24 = vsel %vm298_vm3, %v4419_v7, %v4421_v57  ;;  %v4423_v22 = vsel %vm298_vm3, %v4421_v57, %v4419_v7 }
 0x6d0   : > { %v4425_v51 = vpop.permute.xlu0 %4424 }
 0x6d1   : > { %v4427_v29 = vpop.permute.xlu1 %4426 }
 0x6d2   : > { %v4428_v16 = vsel %vm305_vm2, %v4425_v51, %v4427_v29  ;;  %v4429_v52 = vsel %vm305_vm2, %v4427_v29, %v4425_v51 }
 0x6d3   : > { %v4430_v21 = vsel %vm317_vm4, %v4428_v16, %v4423_v22  ;;  %v4431_v4 = vsel %vm318_vm5, %v4429_v52, %v4422_v24  ;;  %v4433_v29 = vsel %vm331_vm7, %v4422_v24, %v4429_v52  ;;  %v4432_v60 = vsel %vm330_vm8, %v4423_v22, %v4428_v16 }
 0x6d4   : > { %v4908_v5 = vand.u32 4294901760, %v4431_v4  ;;  %v4910_v27 = vand.u32 4294901760, %v4430_v21  ;;  %v5378_v47 = vand.u32 4294901760, %v4433_v29 }
 0x6d6   : > { %v4987_v13 = vsub.f32 %v4431_v4, %v4908_v5  ;;  %v4993_v36 = vsub.f32 %v4430_v21, %v4910_v27  ;;  %4909 = vmatprep.subr.mxu1 %v4908_v5  ;;  %v5376_v21 = vsel %vm337_vm0, %v8603_v23, 0  ;;  %v5457_v4 = vsub.f32 %v4433_v29, %v5378_v47 }
 0x6d7   : > { %4911 = vmatpush1.msra.mxu1 %v4910_v27 }
 0x6d8   : > { %v4994_v18 = vand.u32 4294901760, %v4993_v36  ;;  %4980 = vmatmul.mubr.f32.vlgmr.msra.gmra.mrb[16].mxu1 %v4979_v11  ;;  %v4988_v25 = vand.u32 4294901760, %v4987_v13  ;;  %v5445_v11 = vand.u32 4294901760, %v5376_v21  ;;  %v5458_v24 = vand.u32 4294901760, %v5457_v4 }
 0x6d9   : > { %5060 = vmatprep.mubr.f32.mxu1 %v12265_v40 }
 0x6da   : > { %v4989_v15 = vsub.f32 %v4987_v13, %v4988_v25  ;;  %v4995_v7 = vsub.f32 %v4993_v36, %v4994_v18  ;;  %v5446_v52 = vsub.f32 %v5376_v21, %v5445_v11 }
 0x6dc   : > { %v4990_v57 = vand.u32 4294901760, %v4989_v15  ;;  %v4996_v51 = vand.u32 4294901760, %v4995_v7 }
 0x6de   : > { %4991 = vmatprep.subr.mxu1 %v4990_v57 }
 0x6df   : > { %4997 = vmatpush1.msra.mxu1 %v4996_v51 }
 0x6e0   : > { %5062 = vmatmul.mubr.f32.vlgmr.msra.gmra.mrb[16].mxu1 %v4975_v1  ;;  %5070 = vmatprep.subr.mxu1 %v4987_v13  ;;  %v5380_v13 = vand.u32 4294901760, %v4432_v60 }
 0x6e1   : > { %5073 = vmatpush1.msra.mxu1 %v4993_v36  ;;  %5136 = vmatprep.mubr.f32.mxu1 %v12265_v40  ;;  %v5459_v36 = vsub.f32 %v5457_v4, %v5458_v24 }
 0x6e2   : > { %5146 = vmatprep.subr.mxu1 %v4908_v5 }
 0x6e3   : > { %v5460_v15 = vand.u32 4294901760, %v5459_v36  ;;  %v12307_v36 = vld [vmem:[#allocation40_spill] sm:$0xff] }
 0x6e8   : > { %5139 = vmatmul.mubr.f32.vlgmr.msra.gmra.mrb[16].mxu1 %v4976_v32 }
 0x6e9   : > { %5148 = vmatpush1.msra.mxu1 %v4910_v27  ;;  %5211 = vmatprep.mubr.f32.mxu1 %v12265_v40 }
 0x6ea   : > { %5224 = vmatprep.subr.mxu1 %v4988_v25 }
 0x6f0   : > { %5215 = vmatmul.mubr.f32.vlgmr.msra.gmra.mrb[16].mxu1 %v4977_v10  ;;  %v5463_v10 = vsub.f32 %v4432_v60, %v5380_v13 }
 0x6f1   : > { %5228 = vmatpush1.msra.mxu1 %v4994_v18  ;;  %5291 = vmatprep.mubr.f32.mxu1 %v12265_v40  ;;  %v5447_v18 = vand.u32 4294901760, %v5446_v52 }
 0x6f2   : > { %5300 = vmatprep.subr.mxu1 %v4908_v5  ;;  %v5464_v25 = vand.u32 4294901760, %v5463_v10 }
 0x6f3   : > { %v5448_v5 = vsub.f32 %v5446_v52, %v5447_v18 }
 0x6f4   : > { %v5465_v22 = vsub.f32 %v5463_v10, %v5464_v25 }
 0x6f5   : > { %v5449_v16 = vand.u32 4294901760, %v5448_v5  ;;  %v12311_v5 = vld [vmem:[#allocation44_spill] sm:$0xff] }
 0x6f6   : > { %v5466_v7 = vand.u32 4294901760, %v5465_v22  ;;  %v12312_v22 = vld [vmem:[#allocation45_spill] sm:$0xff] }
 0x6f8   : > { %5293 = vmatmul.mubr.f32.vlgmr.msra.gmra.mrb[16].mxu1 %v4975_v1 }
 0x6f9   : > { %5302 = vmatpush1.msra.mxu1 %v4910_v27  ;;  %5365 = vmatprep.mubr.f32.mxu1 %v12265_v40 }
 0x6fa   : > { %5379 = vmatprep.subr.mxu1 %v5378_v47 }
 0x700   : > { %5367 = vmatmul.mubr.f32.vlgmr.msra.gmra.mrb[16].mxu1 %v4975_v1 }
 0x701   : > { %5381 = vmatpush1.msra.mxu1 %v5380_v13  ;;  %5444 = vmatprep.mubr.f32.mxu1 %v12265_v40 }
 0x702   : > { %5461 = vmatprep.subr.mxu1 %v5460_v15  ;;  %v12310_v15 = vld [vmem:[#allocation43_spill] sm:$0xff] }
 0x708   : > { %5450 = vmatmul.mubr.f32.vlgmr.msra.gmra.mrb[16].mxu1 %v5449_v16  ;;  %v12313_v16 = vld [vmem:[#allocation46_spill] sm:$0xff] }
 0x709   : > { %5467 = vmatpush1.msra.mxu1 %v5466_v7  ;;  %5530 = vmatprep.mubr.f32.mxu1 %v12265_v40  ;;  %v12314_v7 = vld [vmem:[#allocation47_spill] sm:$0xff] }
 0x70a   : > { %5540 = vmatprep.subr.mxu1 %v5457_v4 }
 0x710   : > { %5532 = vmatmul.mubr.f32.vlgmr.msra.gmra.mrb[16].mxu1 %v5445_v11 }
 0x711   : > { %5543 = vmatpush1.msra.mxu1 %v5463_v10  ;;  %5606 = vmatprep.mubr.f32.mxu1 %v12265_v40  ;;  %v12306_v10 = vld [vmem:[#allocation39_spill] sm:$0xff] }
 0x712   : > { %5616 = vmatprep.subr.mxu1 %v5378_v47 }
 0x718   : > { %5609 = vmatmul.mubr.f32.vlgmr.msra.gmra.mrb[16].mxu1 %v5446_v52  ;;  %v12305_v52 = vld [vmem:[#allocation38_spill] sm:$0xff] }
 0x719   : > { %5618 = vmatpush1.msra.mxu1 %v5380_v13  ;;  %5681 = vmatprep.mubr.f32.mxu1 %v12265_v40 }
 0x71a   : > { %5694 = vmatprep.subr.mxu1 %v5458_v24  ;;  %v12304_v24 = vld [vmem:[#allocation5_spill] sm:$0xff] }
 0x720   : > { %5685 = vmatmul.mubr.f32.vlgmr.msra.gmra.mrb[16].mxu1 %v5447_v18  ;;  %v12308_v18 = vld [vmem:[#allocation41_spill] sm:$0xff] }
 0x721   : > { %5698 = vmatpush1.msra.mxu1 %v5464_v25  ;;  %5761 = vmatprep.mubr.f32.mxu1 %v12265_v40  ;;  %v12309_v25 = vld [vmem:[#allocation42_spill] sm:$0xff] }
 0x722   : > { %5770 = vmatprep.subr.mxu1 %v5378_v47 }
 0x728   : > { %5763 = vmatmul.mubr.f32.vlgmr.msra.gmra.mrb[16].mxu1 %v5445_v11 }
 0x729   : > { %5772 = vmatpush1.msra.mxu1 %v5380_v13  ;;  %5835 = vmatprep.mubr.f32.mxu1 %v12265_v40  ;;  %v12303_v13 = vld [vmem:[#allocation27_spill] sm:$0xff] }
 0x72a   : > { %9931 = vmatprep.subr.bf16.mxu1 %v12198_v49 }
 0x730   : > { %5837 = vmatmul.mubr.f32.vlgmr.msra.gmra.mrb[16].mxu1 %v5445_v11  ;;  %v12302_v11 = vld [vmem:[#allocation28_spill] sm:$0xff] }
 0x731   : > { %9933 = vmatpush3.bf16.msra.mxu1 %v10606_v35 }
 0x732   : > { %9935 = vmatprep.subr.bf16.mxu1 %v10615_v38 }
 0x735   : > { %9937 = vmatpush3.bf16.msra.mxu1 %v10645_v45 }
 0x736   : > { %9939 = vmatprep.subr.bf16.mxu1 %v10653_v48 }
 0x739   : > { %9941 = vmatpush3.bf16.msra.mxu1 %v10683_v55 }
 0x73a   : > { %9943 = vmatprep.subr.bf16.mxu1 %v10691_v58 }
 0x73d   : > { %9945 = vmatpush3.bf16.msra.mxu1 %v12270_v61 }
 0x73e   : > { %9947 = vmatprep.subr.bf16.mxu1 %v12272_v34 }
 0x741   : > { %9949 = vmatpush3.bf16.msra.mxu1 %v12274_v59 }
 0x742   : > { %9951 = vmatprep.subr.bf16.mxu1 %v12276_v53 }
 0x745   : > { %9953 = vmatpush3.bf16.msra.mxu1 %v12193_v26 }
 0x746   : > { %9955 = vmatprep.subr.bf16.mxu1 %v12194_v19 }
 0x749   : > { %9957 = vmatpush3.bf16.msra.mxu1 %v12280_v20 }
 0x74a   : > { %9959 = vmatprep.subr.bf16.mxu1 %v12282_v63 }
 0x74d   : > { %9961 = vmatpush3.bf16.msra.mxu1 %v12197_v3 }
 0x74e   : > { %9995 = vmatprep.subr.bf16.mxu1 %v12198_v49 }
 0x803   : > { %v11674_v1 = vpop.f32.mrb[16].mxu1 }
 0x804   : > { %v11677_v27 = vand.u32 4294901760, %v11674_v1  ;;  %v11679_v57 = vpop.f32.mrb[17].mxu1 }
 0x805   : > { %v11682_v51 = vand.u32 4294901760, %v11679_v57 }
 0x806   : > { %v11686_v54 = vsub.f32 %v11674_v1, %v11677_v27 }
 0x807   : > { %v5942_v29 = vsub.f32 %v11679_v57, %v11682_v51 }
 0x808   : > { %v5949_v23 = vand.u32 4294901760, %v11686_v54 }
 0x809   : > { %v5943_v47 = vand.u32 4294901760, %v5942_v29 }
 0x80a   : > { %v5950_v21 = vsub.f32 %v11686_v54, %v5949_v23 }
 0x80b   : > { %6426 = vmatprep.mubr.f32.mxu1 %v5943_v47  ;;  %v5944_v32 = vsub.f32 %v5942_v29, %v5943_v47  ;;  %v12317_v47 = vld [vmem:[#allocation31_spill] sm:$0xff] }
 0x80c   : > { %6430 = vmatmul.mubr.f32.vlgmr.msra.gmra.mrb[18].mxu1 %v5949_v23  ;;  %v5951_v4 = vand.u32 4294901760, %v5950_v21  ;;  %v12316_v23 = vld [vmem:[#allocation30_spill] sm:$0xff]  ;;  %v12318_v21 = vld [vmem:[#allocation32_spill] sm:$0xff] }
 0x80d   : > { %9997 = vmatpush3.bf16.msra.mxu1 %v10606_v35  ;;  %6700 = vmatprep.mubr.f32.mxu1 %v11682_v51  ;;  %v5945_v60 = vand.u32 4294901760, %v5944_v32  ;;  %v12319_v32 = vld [vmem:[#allocation19_spill] sm:$0xff] }
 0x80e   : > { %9999 = vmatprep.subr.bf16.mxu1 %v10615_v38 }
 0x80f   : > { %5946 = vmatprep.mubr.f32.mxu0 %v5945_v60  ;;  %v12320_v60 = vld [vmem:[#allocation20_spill] sm:$0xff] }
 0x810   : > { %5952 = vmatmul.mubr.f32.vlgmr.msra.gmra.mrb[14].mxu0 %v5951_v4  ;;  %v12321_v4 = vld [vmem:[#allocation48_spill] sm:$0xff] }
 0x811   : > { %9869 = vmatpush3.bf16.msra.mxu0 %v11050_v43  ;;  %10001 = vmatpush3.bf16.msra.mxu1 %v10645_v45 }
 0x812   : > { %6182 = vmatprep.mubr.f32.mxu0 %v11682_v51  ;;  %9871 = vmatprep.subr.bf16.mxu0 %v11102_v46 }
 0x813   : > { %10003 = vmatprep.subr.bf16.mxu1 %v10653_v48 }
 0x815   : > { %9873 = vmatpush3.bf16.msra.mxu0 %v11149_v39  ;;  %10005 = vmatpush3.bf16.msra.mxu1 %v10683_v55 }
 0x816   : > { %9875 = vmatprep.subr.bf16.mxu0 %v11151_v2  ;;  %10007 = vmatprep.subr.bf16.mxu1 %v10691_v58 }
 0x819   : > { %9877 = vmatpush3.bf16.msra.mxu0 %v11184_v14  ;;  %10009 = vmatpush3.bf16.msra.mxu1 %v12270_v61 }
 0x81a   : > { %9879 = vmatprep.subr.bf16.mxu0 %v11186_v50  ;;  %10011 = vmatprep.subr.bf16.mxu1 %v12272_v34 }
 0x81d   : > { %9881 = vmatpush3.bf16.msra.mxu0 %v11206_v9  ;;  %10013 = vmatpush3.bf16.msra.mxu1 %v12274_v59 }
 0x81e   : > { %9883 = vmatprep.subr.bf16.mxu0 %v11218_v42  ;;  %10015 = vmatprep.subr.bf16.mxu1 %v12276_v53 }
 0x821   : > { %9885 = vmatpush3.bf16.msra.mxu0 %v11222_v37  ;;  %10017 = vmatpush3.bf16.msra.mxu1 %v12193_v26 }
 0x822   : > { %9887 = vmatprep.subr.bf16.mxu0 %v11226_v62  ;;  %10019 = vmatprep.subr.bf16.mxu1 %v12194_v19 }
 0x825   : > { %9889 = vmatpush3.bf16.msra.mxu0 %v11230_v33  ;;  %10021 = vmatpush3.bf16.msra.mxu1 %v12280_v20 }
 0x826   : > { %9891 = vmatprep.subr.bf16.mxu0 %v10937_v6  ;;  %10023 = vmatprep.subr.bf16.mxu1 %v12282_v63 }
 0x829   : > { %9893 = vmatpush3.bf16.msra.mxu0 %v10942_v30  ;;  %10025 = vmatpush3.bf16.msra.mxu1 %v12197_v3 }
 0x82a   : > { %9895 = vmatprep.subr.bf16.mxu0 %v10944_v17  ;;  %10027 = vmatprep.subr.bf16.mxu1 %v12198_v49 }
 0x82c   : > { %6702 = vmatmul.mubr.f32.vlgmr.msra.gmra.mrb[20].mxu1 %v11677_v27 }
 0x82d   : > { %9897 = vmatpush3.bf16.msra.mxu0 %v12302_v11  ;;  %10029 = vmatpush3.bf16.msra.mxu1 %v10606_v35 }
 0x82e   : > { %9899 = vmatprep.subr.bf16.mxu0 %v12303_v13  ;;  %10031 = vmatprep.subr.bf16.mxu1 %v10615_v38 }
 0x830   : > { %6184 = vmatmul.mubr.f32.vlgmr.msra.gmra.mrb[16].mxu0 %v11677_v27 }
 0x831   : > { %9901 = vmatpush3.bf16.msra.mxu0 %v12304_v24  ;;  %6319 = vmatprep.mubr.f32.mxu0 %v5942_v29  ;;  %v12315_v29 = vld [vmem:[#allocation29_spill] sm:$0xff] }
 0x832   : > { %9903 = vmatprep.subr.bf16.mxu0 %v12305_v52  ;;  %10033 = vmatpush3.bf16.msra.mxu1 %v10645_v45 }
 0x833   : > { %10035 = vmatprep.subr.bf16.mxu1 %v10653_v48 }
 0x835   : > { %9905 = vmatpush3.bf16.msra.mxu0 %v12306_v10 }
 0x836   : > { %9907 = vmatprep.subr.bf16.mxu0 %v12307_v36  ;;  %10037 = vmatpush3.bf16.msra.mxu1 %v10683_v55 }
 0x837   : > { %10039 = vmatprep.subr.bf16.mxu1 %v10691_v58 }
 0x839   : > { %9909 = vmatpush3.bf16.msra.mxu0 %v12308_v18 }
 0x83a   : > { %9911 = vmatprep.subr.bf16.mxu0 %v12309_v25  ;;  %10041 = vmatpush3.bf16.msra.mxu1 %v12270_v61 }
 0x83b   : > { %10043 = vmatprep.subr.bf16.mxu1 %v12272_v34 }
 0x83d   : > { %9913 = vmatpush3.bf16.msra.mxu0 %v12310_v15 }
 0x83e   : > { %9915 = vmatprep.subr.bf16.mxu0 %v12311_v5  ;;  %10045 = vmatpush3.bf16.msra.mxu1 %v12274_v59 }
 0x83f   : > { %10047 = vmatprep.subr.bf16.mxu1 %v12276_v53 }
 0x841   : > { %9917 = vmatpush3.bf16.msra.mxu0 %v12312_v22 }
 0x842   : > { %9919 = vmatprep.subr.bf16.mxu0 %v12313_v16  ;;  %10049 = vmatpush3.bf16.msra.mxu1 %v12193_v26 }
 0x843   : > { %10051 = vmatprep.subr.bf16.mxu1 %v12194_v19 }
 0x845   : > { %9921 = vmatpush3.bf16.msra.mxu0 %v12314_v7 }
 0x846   : > { %9923 = vmatprep.subr.bf16.mxu0 %v12315_v29  ;;  %10053 = vmatpush3.bf16.msra.mxu1 %v12280_v20  ;;  %v12322_v29 = vld [vmem:[#allocation37_spill] sm:$0xff] }
 0x847   : > { %10055 = vmatprep.subr.bf16.mxu1 %v12282_v63 }
 0x849   : > { %9925 = vmatpush3.bf16.msra.mxu0 %v12316_v23  ;;  %v12323_v23 = vld [vmem:[#allocation49_spill] sm:$0xff] }
 0x84a   : > { %9927 = vmatprep.subr.bf16.mxu0 %v12317_v47  ;;  %10057 = vmatpush3.bf16.msra.mxu1 %v12197_v3  ;;  %v12324_v47 = vld [vmem:[#allocation50_spill] sm:$0xff]  ;;  %v12325_v3 = vld [vmem:[#allocation51_spill] sm:$0xff] }
 0x84b   : > { %10091 = vmatprep.subr.bf16.mxu1 %v12303_v13  ;;  %v12326_v13 = vld [vmem:[#allocation52_spill] sm:$0xff] }
 0x84d   : > { %9929 = vmatpush3.bf16.msra.mxu0 %v12318_v21  ;;  %v12327_v21 = vld [vmem:[#allocation53_spill] sm:$0xff] }
 0x84e   : > { %9963 = vmatprep.subr.bf16.mxu0 %v12319_v32  ;;  %v12328_v32 = vld [vmem:[#allocation54_spill] sm:$0xff] }
 0x850   : > { %6322 = vmatmul.mubr.f32.vlgmr.msra.gmra.mrb[18].mxu0 %v11686_v54  ;;  %v12329_v54 = vld [vmem:[#allocation55_spill] sm:$0xff] }
 0x851   : > { %9965 = vmatpush3.bf16.msra.mxu0 %v12320_v60  ;;  %6596 = vmatprep.mubr.f32.mxu0 %v11682_v51  ;;  %v12330_v60 = vld [vmem:[#allocation56_spill] sm:$0xff]  ;;  %v12331_v51 = vld [vmem:[#allocation23_spill] sm:$0xff] }
 0x852   : > { %9967 = vmatprep.subr.bf16.mxu0 %v12321_v4  ;;  %v12332_v4 = vld [vmem:[#allocation33_spill] sm:$0xff] }
 0x855   : > { %9969 = vmatpush3.bf16.msra.mxu0 %v12322_v29  ;;  %v12333_v29 = vld [vmem:[#allocation24_spill] sm:$0xff] }
 0x856   : > { %9971 = vmatprep.subr.bf16.mxu0 %v12323_v23  ;;  %v12334_v23 = vld [vmem:[#allocation34_spill] sm:$0xff] }
 0x859   : > { %9973 = vmatpush3.bf16.msra.mxu0 %v12324_v47 }
 0x85a   : > { %9975 = vmatprep.subr.bf16.mxu0 %v12325_v3 }
 0x85d   : > { %9977 = vmatpush3.bf16.msra.mxu0 %v12326_v13 }
 0x85e   : > { %9979 = vmatprep.subr.bf16.mxu0 %v12327_v21 }
 0x861   : > { %9981 = vmatpush3.bf16.msra.mxu0 %v12328_v32  ;;  %v12335_v32 = vld [vmem:[#allocation25_spill] sm:$0xff] }
 0x862   : > { %9983 = vmatprep.subr.bf16.mxu0 %v12329_v54 }
 0x865   : > { %9985 = vmatpush3.bf16.msra.mxu0 %v12330_v60 }
 0x866   : > { %9987 = vmatprep.subr.bf16.mxu0 %v12331_v51 }
 0x869   : > { %9989 = vmatpush3.bf16.msra.mxu0 %v12332_v4 }
 0x86a   : > { %9991 = vmatprep.subr.bf16.mxu0 %v12333_v29 }
 0x86d   : > { %9993 = vmatpush3.bf16.msra.mxu0 %v12334_v23 }
 0x86e   : > { %6712 = vmatprep.subr.mxu0 %v11432_v31 }
 0x870   : > { %6598 = vmatmul.mubr.f32.vlgmr.msra.gmra.mrb[20].mxu0 %v11677_v27 }
 0x871   : > { %6714 = vmatpush1.msra.mxu0 %v11434_v56  ;;  %6777 = vmatprep.mubr.f32.mxu0 %v12265_v40 }
 0x872   : > { %6794 = vmatprep.subr.mxu0 %v12335_v32 }
 0x8df   : > { %v9167_v54 = vpop.f32.mrb[18].mxu1 }
 0x8e0   : > { %v9168_v60 = vpop.f32.mrb[19].mxu1 }
 0x8e1   : > { %v9169_v21 = vadd.f32 %v9168_v60, %v9167_v54 }
 0x8e3   : > { %v9062_v51 = vpop.f32.mrb[14].mxu0 }
 0x8e4   : > { %v9063_v13 = vpop.f32.mrb[15].mxu0 }
 0x8e5   : > { %v9064_v4 = vadd.f32 %v9063_v13, %v9062_v51 }
 0x8ff   : > { %v9237_v3 = vpop.f32.mrb[20].mxu1 }
 0x900   : > { %v9238_v29 = vpop.f32.mrb[21].mxu1 }
 0x901   : > { %v9239_v47 = vadd.f32 %v9238_v29, %v9237_v3 }
 0x903   : > { %v9097_v23 = vpop.f32.mrb[16].mxu0 }
 0x904   : > { %v9098_v7 = vpop.f32.mrb[17].mxu0 }
 0x905   : > { %v9099_v63 = vadd.f32 %v9098_v7, %v9097_v23  ;;  %v12356_v7 = vld [vmem:[#allocation37_spill] sm:$0xff]  ;;  %v12364_v23 = vld [vmem:[#allocation56_spill] sm:$0xff] }
 0x907   : > { %v6186_v16 = vadd.f32 %v9099_v63, %v9064_v4  ;;  %v12340_v63 = vld [vmem:[#allocation10_spill] sm:$0xff] }
 0x908   : > { %v12368_v4 = vld [vmem:[#allocation34_spill] sm:$0xff] }
 0x923   : > { %v9132_v27 = vpop.f32.mrb[18].mxu0 }
 0x924   : > { %v9133_v20 = vpop.f32.mrb[19].mxu0 }
 0x925   : > { %v9134_v22 = vadd.f32 %v9133_v20, %v9132_v27  ;;  %v12339_v20 = vld [vmem:[#allocation43_spill] sm:$0xff]  ;;  %v12369_v27 = vld [vmem:[#allocation25_spill] sm:$0xff] }
 0x927   : > { %v6324_v19 = vadd.f32 %v9134_v22, %v6186_v16  ;;  %v12352_v22 = vld [vmem:[#allocation32_spill] sm:$0xff]  ;;  %v12353_v16 = vld [vmem:[#allocation19_spill] sm:$0xff] }
 0x929   : > { %v6432_v5 = vadd.f32 %v9169_v21, %v6324_v19  ;;  %v12366_v21 = vld [vmem:[#allocation33_spill] sm:$0xff] }
 0x943   : > { %v9202_v26 = vpop.f32.mrb[20].mxu0 }
 0x944   : > { %v9203_v32 = vpop.f32.mrb[21].mxu0 }
 0x945   : > { %v9204_v15 = vadd.f32 %v9203_v32, %v9202_v26  ;;  %v12367_v32 = vld [vmem:[#allocation24_spill] sm:$0xff] }
 0x947   : > { %v6600_v53 = vadd.f32 %v9204_v15, %v6432_v5  ;;  %v12350_v15 = vld [vmem:[#allocation30_spill] sm:$0xff]  ;;  %v12351_v5 = vld [vmem:[#allocation31_spill] sm:$0xff] }
 0x949   : > { %v6704_v60 = vadd.f32 %v9239_v47, %v6600_v53  ;;  %v12338_v53 = vld [vmem:[#allocation9_spill] sm:$0xff]  ;;  %v12365_v47 = vld [vmem:[#allocation23_spill] sm:$0xff] }
 0x94b   : > { %v6707_v54 = vmul.f32 0.0625, %v6704_v60 }
 0x94d   : > { %v6709_v13 = vsel %vm337_vm0, %v6707_v54, 0 }
 0x94e   : > { %v6778_v51 = vand.u32 4294901760, %v6709_v13 }
 0x950   : > { %v6779_v25 = vsub.f32 %v6709_v13, %v6778_v51 }
 0x952   : > { %v6780_v3 = vand.u32 4294901760, %v6779_v25 }
 0x954   : > { %v6781_v29 = vsub.f32 %v6779_v25, %v6780_v3 }
 0x956   : > { %v6782_v59 = vand.u32 4294901760, %v6781_v29 }
 0x958   : > { %6783 = vmatmul.mubr.f32.vlgmr.msra.gmra.mrb[22].mxu0 %v6782_v59  ;;  %v12337_v59 = vld [vmem:[#allocation42_spill] sm:$0xff] }
 0x959   : > { %6800 = vmatpush1.msra.mxu0 %v11458_v28  ;;  %6863 = vmatprep.mubr.f32.mxu0 %v12265_v40 }
 0x95a   : > { %6873 = vmatprep.subr.mxu0 %v11439_v12 }
 0x960   : > { %6865 = vmatmul.mubr.f32.vlgmr.msra.gmra.mrb[22].mxu0 %v6778_v51 }
 0x961   : > { %6876 = vmatpush1.msra.mxu0 %v11450_v44  ;;  %6939 = vmatprep.mubr.f32.mxu0 %v12265_v40 }
 0x962   : > { %6949 = vmatprep.subr.mxu0 %v11432_v31 }
 0x968   : > { %6942 = vmatmul.mubr.f32.vlgmr.msra.gmra.mrb[22].mxu0 %v6779_v25  ;;  %v12349_v25 = vld [vmem:[#allocation29_spill] sm:$0xff] }
 0x969   : > { %6951 = vmatpush1.msra.mxu0 %v11434_v56  ;;  %7014 = vmatprep.mubr.f32.mxu0 %v12265_v40 }
 0x96a   : > { %7027 = vmatprep.subr.mxu0 %v11442_v41 }
 0x970   : > { %7018 = vmatmul.mubr.f32.vlgmr.msra.gmra.mrb[22].mxu0 %v6780_v3 }
 0x971   : > { %7031 = vmatpush1.msra.mxu0 %v11454_v0  ;;  %7094 = vmatprep.mubr.f32.mxu0 %v12265_v40 }
 0x972   : > { %7103 = vmatprep.subr.mxu0 %v11432_v31 }
 0x978   : > { %7096 = vmatmul.mubr.f32.vlgmr.msra.gmra.mrb[22].mxu0 %v6778_v51 }
 0x979   : > { %7105 = vmatpush1.msra.mxu0 %v11434_v56  ;;  %7168 = vmatprep.mubr.f32.mxu0 %v12265_v40 }
 0x97a   : > { %10059 = vmatprep.subr.bf16.mxu0 %v12267_v8  ;;  %v12336_v8 = vld [vmem:[#allocation8_spill] sm:$0xff] }
 0x980   : > { %7170 = vmatmul.mubr.f32.vlgmr.msra.gmra.mrb[22].mxu0 %v6778_v51 }
 0x981   : > { %10061 = vmatpush3.bf16.msra.mxu0 %v11050_v43 }
 0x982   : > { %10063 = vmatprep.subr.bf16.mxu0 %v11102_v46 }
 0x985   : > { %10065 = vmatpush3.bf16.msra.mxu0 %v11149_v39 }
 0x986   : > { %10067 = vmatprep.subr.bf16.mxu0 %v11151_v2 }
 0x989   : > { %10069 = vmatpush3.bf16.msra.mxu0 %v11184_v14 }
 0x98a   : > { %10071 = vmatprep.subr.bf16.mxu0 %v11186_v50 }
 0x98d   : > { %10073 = vmatpush3.bf16.msra.mxu0 %v11206_v9 }
 0x98e   : > { %10075 = vmatprep.subr.bf16.mxu0 %v11218_v42 }
 0x991   : > { %10077 = vmatpush3.bf16.msra.mxu0 %v11222_v37 }
 0x992   : > { %10079 = vmatprep.subr.bf16.mxu0 %v11226_v62 }
 0x995   : > { %10081 = vmatpush3.bf16.msra.mxu0 %v11230_v33 }
 0x996   : > { %10083 = vmatprep.subr.bf16.mxu0 %v10937_v6 }
 0x999   : > { %10085 = vmatpush3.bf16.msra.mxu0 %v10942_v30 }
 0x99a   : > { %10087 = vmatprep.subr.bf16.mxu0 %v10944_v17 }
 0x99d   : > { %10089 = vmatpush3.bf16.msra.mxu0 %v12302_v11  ;;  %v12343_v11 = vld [vmem:[#allocation45_spill] sm:$0xff] }
 0x99e   : > { %10123 = vmatprep.subr.bf16.mxu0 %v12198_v49 }
 0xa53   : > { %v7171_v46 = vpop.f32.mrb[22].mxu0 }
 0xa54   : > { %v11815_v43 = vsub.f32 %v11674_v1, %v7171_v46  ;;  %v7173_v39 = vpop.f32.mrb[23].mxu0  ;;  %v12341_v1 = vld [vmem:[#allocation44_spill] sm:$0xff] }
 0xa55   : > { %v11818_v2 = vsub.f32 %v11679_v57, %v7173_v39  ;;  %v12342_v57 = vld [vmem:[#allocation16_spill] sm:$0xff] }
 0xa56   : > { %v7178_v14 = vmul.f32 %v11815_v43, %v11815_v43 }
 0xa57   : > { %v7179_v6 = vmul.f32 %v11818_v2, %v11818_v2 }
 0xa58   : > { %v11824_v30 = vand.u32 4294901760, %v7178_v14 }
 0xa59   : > { %v7276_v17 = vand.u32 4294901760, %v7179_v6 }
 0xa5a   : > { %v7283_v50 = vsub.f32 %v7178_v14, %v11824_v30 }
 0xa5b   : > { %v7277_v62 = vsub.f32 %v7179_v6, %v7276_v17  ;;  %7517 = vmatprep.mubr.f32.mxu0 %v7276_v17 }
 0xa5c   : > { %v7284_v9 = vand.u32 4294901760, %v7283_v50  ;;  %7519 = vmatmul.mubr.f32.vlgmr.msra.gmra.mrb[24].mxu0 %v11824_v30 }
 0xa5d   : > { %10125 = vmatpush3.bf16.msra.mxu0 %v10606_v35  ;;  %v7278_v42 = vand.u32 4294901760, %v7277_v62 }
 0xa5e   : > { %10127 = vmatprep.subr.bf16.mxu0 %v10615_v38  ;;  %v7285_v37 = vsub.f32 %v7283_v50, %v7284_v9 }
 0xa5f   : > { %7761 = vmatprep.mubr.f32.mxu0 %v7278_v42  ;;  %v7279_v26 = vsub.f32 %v7277_v62, %v7278_v42 }
 0xa60   : > { %v7286_v19 = vand.u32 4294901760, %v7285_v37 }
 0xa61   : > { %10129 = vmatpush3.bf16.msra.mxu0 %v10645_v45  ;;  %v7280_v33 = vand.u32 4294901760, %v7279_v26 }
 0xa62   : > { %10131 = vmatprep.subr.bf16.mxu0 %v10653_v48 }
 0xa63   : > { %7281 = vmatprep.mubr.f32.mxu1 %v7280_v33 }
 0xa64   : > { %7287 = vmatmul.mubr.f32.vlgmr.msra.gmra.mrb[22].mxu1 %v7286_v19 }
 0xa65   : > { %10093 = vmatpush3.bf16.msra.mxu1 %v12304_v24  ;;  %10133 = vmatpush3.bf16.msra.mxu0 %v10683_v55  ;;  %v12344_v24 = vld [vmem:[#allocation17_spill] sm:$0xff] }
 0xa66   : > { %7654 = vmatprep.mubr.f32.mxu1 %v7277_v62  ;;  %10095 = vmatprep.subr.bf16.mxu1 %v12305_v52  ;;  %v12345_v52 = vld [vmem:[#allocation46_spill] sm:$0xff] }
 0xa67   : > { %10135 = vmatprep.subr.bf16.mxu0 %v10691_v58 }
 0xa69   : > { %10097 = vmatpush3.bf16.msra.mxu1 %v12306_v10  ;;  %10137 = vmatpush3.bf16.msra.mxu0 %v12270_v61  ;;  %v12346_v10 = vld [vmem:[#allocation18_spill] sm:$0xff] }
 0xa6a   : > { %10099 = vmatprep.subr.bf16.mxu1 %v12307_v36  ;;  %10139 = vmatprep.subr.bf16.mxu0 %v12272_v34  ;;  %v12347_v36 = vld [vmem:[#allocation47_spill] sm:$0xff] }
 0xa6d   : > { %10101 = vmatpush3.bf16.msra.mxu1 %v12308_v18  ;;  %10141 = vmatpush3.bf16.msra.mxu0 %v12336_v8  ;;  %v12348_v18 = vld [vmem:[#allocation21_spill] sm:$0xff] }
 0xa6e   : > { %10103 = vmatprep.subr.bf16.mxu1 %v12337_v59  ;;  %10143 = vmatprep.subr.bf16.mxu0 %v12338_v53 }
 0xa71   : > { %10105 = vmatpush3.bf16.msra.mxu1 %v12339_v20  ;;  %10145 = vmatpush3.bf16.msra.mxu0 %v12340_v63 }
 0xa72   : > { %10107 = vmatprep.subr.bf16.mxu1 %v12341_v1  ;;  %10147 = vmatprep.subr.bf16.mxu0 %v12342_v57 }
 0xa75   : > { %10109 = vmatpush3.bf16.msra.mxu1 %v12343_v11  ;;  %10149 = vmatpush3.bf16.msra.mxu0 %v12344_v24 }
 0xa76   : > { %10111 = vmatprep.subr.bf16.mxu1 %v12345_v52  ;;  %10151 = vmatprep.subr.bf16.mxu0 %v12346_v10 }
 0xa79   : > { %10113 = vmatpush3.bf16.msra.mxu1 %v12347_v36  ;;  %10153 = vmatpush3.bf16.msra.mxu0 %v12348_v18 }
 0xa7a   : > { %10115 = vmatprep.subr.bf16.mxu1 %v12349_v25  ;;  %10187 = vmatprep.subr.bf16.mxu0 %v12198_v49  ;;  %v12354_v49 = vld [vmem:[#allocation20_spill] sm:$0xff] }
 0xa7c   : > { %7765 = vmatmul.mubr.f32.vlgmr.msra.gmra.mrb[26].mxu0 %v7284_v9 }
 0xa7d   : > { %10117 = vmatpush3.bf16.msra.mxu1 %v12350_v15  ;;  %10189 = vmatpush3.bf16.msra.mxu0 %v10606_v35  ;;  %v12355_v35 = vld [vmem:[#allocation48_spill] sm:$0xff] }
 0xa7e   : > { %8035 = vmatprep.mubr.f32.mxu0 %v7276_v17  ;;  %10119 = vmatprep.subr.bf16.mxu1 %v12351_v5 }
 0xa7f   : > { %10191 = vmatprep.subr.bf16.mxu0 %v10615_v38  ;;  %v12357_v38 = vld [vmem:[#allocation49_spill] sm:$0xff] }
 0xa81   : > { %10121 = vmatpush3.bf16.msra.mxu1 %v12352_v22  ;;  %10193 = vmatpush3.bf16.msra.mxu0 %v10645_v45  ;;  %v12358_v45 = vld [vmem:[#allocation50_spill] sm:$0xff] }
 0xa82   : > { %10155 = vmatprep.subr.bf16.mxu1 %v12353_v16  ;;  %10195 = vmatprep.subr.bf16.mxu0 %v10653_v48  ;;  %v12359_v48 = vld [vmem:[#allocation51_spill] sm:$0xff] }
 0xa84   : > { %7657 = vmatmul.mubr.f32.vlgmr.msra.gmra.mrb[24].mxu1 %v7283_v50 }
 0xa85   : > { %10157 = vmatpush3.bf16.msra.mxu1 %v12354_v49  ;;  %7931 = vmatprep.mubr.f32.mxu1 %v7276_v17 }
 0xa86   : > { %10197 = vmatpush3.bf16.msra.mxu0 %v10683_v55  ;;  %10159 = vmatprep.subr.bf16.mxu1 %v12355_v35  ;;  %v12360_v55 = vld [vmem:[#allocation52_spill] sm:$0xff] }
 0xa87   : > { %10199 = vmatprep.subr.bf16.mxu0 %v10691_v58  ;;  %v12361_v58 = vld [vmem:[#allocation53_spill] sm:$0xff] }
 0xa89   : > { %10161 = vmatpush3.bf16.msra.mxu1 %v12356_v7 }
 0xa8a   : > { %10201 = vmatpush3.bf16.msra.mxu0 %v12270_v61  ;;  %10163 = vmatprep.subr.bf16.mxu1 %v12357_v38  ;;  %v12362_v61 = vld [vmem:[#allocation54_spill] sm:$0xff] }
 0xa8b   : > { %10203 = vmatprep.subr.bf16.mxu0 %v12272_v34  ;;  %v12363_v34 = vld [vmem:[#allocation55_spill] sm:$0xff] }
 0xa8d   : > { %10165 = vmatpush3.bf16.msra.mxu1 %v12358_v45 }
 0xa8e   : > { %10205 = vmatpush3.bf16.msra.mxu0 %v12336_v8  ;;  %10167 = vmatprep.subr.bf16.mxu1 %v12359_v48 }
 0xa8f   : > { %10207 = vmatprep.subr.bf16.mxu0 %v12338_v53 }
 0xa91   : > { %10169 = vmatpush3.bf16.msra.mxu1 %v12360_v55 }
 0xa92   : > { %10209 = vmatpush3.bf16.msra.mxu0 %v12340_v63  ;;  %10171 = vmatprep.subr.bf16.mxu1 %v12361_v58 }
 0xa93   : > { %10211 = vmatprep.subr.bf16.mxu0 %v12342_v57 }
 0xa95   : > { %10173 = vmatpush3.bf16.msra.mxu1 %v12362_v61 }
 0xa96   : > { %10213 = vmatpush3.bf16.msra.mxu0 %v12344_v24  ;;  %10175 = vmatprep.subr.bf16.mxu1 %v12363_v34 }
 0xa97   : > { %10215 = vmatprep.subr.bf16.mxu0 %v12346_v10 }
 0xa99   : > { %10177 = vmatpush3.bf16.msra.mxu1 %v12364_v23 }
 0xa9a   : > { %10217 = vmatpush3.bf16.msra.mxu0 %v12348_v18  ;;  %10179 = vmatprep.subr.bf16.mxu1 %v12365_v47  ;;  %v10374_v18 = vld [vmem:[%s10536_s15 + $0x8] sm:$0xff] }
 0xa9d   : > { %8037 = vmatmul.mubr.f32.vlgmr.msra.gmra.mrb[28].mxu0 %v11824_v30  ;;  %10181 = vmatpush3.bf16.msra.mxu1 %v12366_v21 }
 0xa9e   : > { %10183 = vmatprep.subr.bf16.mxu1 %v12367_v32 }
 0xaa1   : > { %10185 = vmatpush3.bf16.msra.mxu1 %v12368_v4 }
 0xaa2   : > { %8049 = vmatprep.subr.mxu1 %v11432_v31 }
 0xaa4   : > { %7933 = vmatmul.mubr.f32.vlgmr.msra.gmra.mrb[26].mxu1 %v11824_v30 }
 0xaa5   : > { %8051 = vmatpush1.msra.mxu1 %v11434_v56  ;;  %8114 = vmatprep.mubr.f32.mxu1 %v12265_v40 }
 0xaa6   : > { %8131 = vmatprep.subr.mxu1 %v12369_v27 }
 0xb2f   : > { %v9307_v60 = vpop.f32.mrb[24].mxu0 }
 0xb30   : > { %v9308_v54 = vpop.f32.mrb[25].mxu0 }
 0xb31   : > { %v9309_v13 = vadd.f32 %v9308_v54, %v9307_v60 }
 0xb37   : > { %v9272_v51 = vpop.f32.mrb[22].mxu1 }
 0xb38   : > { %v9273_v3 = vpop.f32.mrb[23].mxu1 }
 0xb39   : > { %v9274_v29 = vadd.f32 %v9273_v3, %v9272_v51 }
 0xb3b   : > { %v7521_v46 = vadd.f32 %v9309_v13, %v9274_v29 }
 0xb4f   : > { %v9377_v39 = vpop.f32.mrb[26].mxu0 }
 0xb50   : > { %v9378_v14 = vpop.f32.mrb[27].mxu0 }
 0xb51   : > { %v9379_v6 = vadd.f32 %v9378_v14, %v9377_v39 }
 0xb57   : > { %v9342_v17 = vpop.f32.mrb[24].mxu1 }
 0xb58   : > { %v9343_v50 = vpop.f32.mrb[25].mxu1 }
 0xb59   : > { %v9344_v62 = vadd.f32 %v9343_v50, %v9342_v17 }
 0xb5b   : > { %v7659_v30 = vadd.f32 %v9344_v62, %v7521_v46 }
 0xb5d   : > { %v7767_v9 = vadd.f32 %v9379_v6, %v7659_v30 }
 0xb70   : > { %v9447_v42 = vpop.f32.mrb[28].mxu0 }
 0xb71   : > { %v9448_v37 = vpop.f32.mrb[29].mxu0 }
 0xb72   : > { %v9449_v26 = vadd.f32 %v9448_v37, %v9447_v42 }
 0xb77   : > { %v9412_v33 = vpop.f32.mrb[26].mxu1 }
 0xb78   : > { %v9413_v19 = vpop.f32.mrb[27].mxu1 }
 0xb79   : > { %v9414_v8 = vadd.f32 %v9413_v19, %v9412_v33 }
 0xb7b   : > { %v7935_v59 = vadd.f32 %v9414_v8, %v7767_v9 }
 0xb7d   : > { %v8039_v53 = vadd.f32 %v9449_v26, %v7935_v59 }
 0xb7f   : > { %v8042_v20 = vmul.f32 0.0625, %v8039_v53 }
 0xb81   : > { %v8043_v63 = vadd.f32 1e-05, %v8042_v20 }
 0xb83   : > { %10371 = vrsqrt.f32 %v8043_v63 }
 0xb8d   : > { %v10372_v1 = vpop.eup %10371 }
 0xb8e   : > { %v8046_v57 = vsel %vm337_vm0, %v10372_v1, 0 }
 0xb8f   : > { %v8115_v11 = vand.u32 4294901760, %v8046_v57 }
 0xb91   : > { %v8116_v24 = vsub.f32 %v8046_v57, %v8115_v11 }
 0xb93   : > { %v8117_v52 = vand.u32 4294901760, %v8116_v24 }
 0xb95   : > { %v8118_v10 = vsub.f32 %v8116_v24, %v8117_v52 }
 0xb97   : > { %v8119_v36 = vand.u32 4294901760, %v8118_v10 }
 0xb99   : > { %8120 = vmatmul.mubr.f32.vlgmr.msra.gmra.mrb[28].mxu1 %v8119_v36 }
 0xb9a   : > { %8137 = vmatpush1.msra.mxu1 %v11458_v28  ;;  %8200 = vmatprep.mubr.f32.mxu1 %v12265_v40 }
 0xb9b   : > { %8210 = vmatprep.subr.mxu1 %v11439_v12 }
 0xba1   : > { %8202 = vmatmul.mubr.f32.vlgmr.msra.gmra.mrb[28].mxu1 %v8115_v11 }
 0xba2   : > { %8213 = vmatpush1.msra.mxu1 %v11450_v44  ;;  %8276 = vmatprep.mubr.f32.mxu1 %v12265_v40 }
 0xba3   : > { %8286 = vmatprep.subr.mxu1 %v11432_v31 }
 0xba9   : > { %8279 = vmatmul.mubr.f32.vlgmr.msra.gmra.mrb[28].mxu1 %v8116_v24 }
 0xbaa   : > { %8288 = vmatpush1.msra.mxu1 %v11434_v56  ;;  %8351 = vmatprep.mubr.f32.mxu1 %v12265_v40 }
 0xbab   : > { %8364 = vmatprep.subr.mxu1 %v11442_v41 }
 0xbb1   : > { %8355 = vmatmul.mubr.f32.vlgmr.msra.gmra.mrb[28].mxu1 %v8117_v52 }
 0xbb2   : > { %8368 = vmatpush1.msra.mxu1 %v11454_v0  ;;  %8431 = vmatprep.mubr.f32.mxu1 %v12265_v40 }
 0xbb3   : > { %8440 = vmatprep.subr.mxu1 %v11432_v31  ;;  %v10373_v31 = vld [vmem:[%s10536_s15] sm:$0xff]  ;;  %s10443_s15 = smov [#allocation2]  }
 0xbb4   : > { %s10379_s26 = sshll.u32 %s10443_s15, 4  ;;  %s10380_s26 = int_to_ptr.vmem [resolvable:$false] %s10379_s26 }
 0xbb5   : > { %s10381_s16 = scalar_lea.vmem %s10380_s26, 512  ;;  %p10382_p0 = scmp.lt.s32.totalorder %s11922_s13, %s10380_s26 }
 0xbb6   : > { %p10383_p1 = scmp.lt.s32.totalorder %s10381_s16, %s10375_s20 }
 0xbb8   : > { %p10384_p2 = por %p10383_p1, %p10382_p0 }
 0xbb9   : > { %8433 = vmatmul.mubr.f32.vlgmr.msra.gmra.mrb[28].mxu1 %v8115_v11 }
 0xbba   : > { %8442 = vmatpush1.msra.mxu1 %v11434_v56  ;;  %8505 = vmatprep.mubr.f32.mxu1 %v12265_v40  ;;  %p10385_p3 = pnand %p10384_p2, %p10378_p13 }
 0xbc1   : > { %8507 = vmatmul.mubr.f32.vlgmr.msra.gmra.mrb[28].mxu1 %v8115_v11 }
 0xc94   : > { %v8508_v12 = vpop.f32.mrb[28].mxu1 }
 0xc95   : > { %v8513_v41 = vmul.f32 %v8508_v12, %v11815_v43  ;;  %v8510_v44 = vpop.f32.mrb[29].mxu1 }
 0xc96   : > { %v8514_v0 = vmul.f32 %v8510_v44, %v11818_v2 }
 0xc97   : > { %v8515_v28 = vadd.f32 %v10373_v31, %v8513_v41 }
 0xc98   : > { %v8516_v25 = vadd.f32 %v10374_v18, %v8514_v0 }
 0xc99   : > { %8517 = vst [vmem:[%s245_s12] sm:$0xff] %v8515_v28 }
 0xc9a   : > { %8518 = vst [vmem:[%s245_s12 + $0x8] sm:$0xff] %v8516_v25 }
 0xc9b   : > { %10388 = shalt.err (!%p10385_p3)
}
 0xc9c   : > { %s10389_s17 = scalar_lea.hbm %s11920_s19, 256  ;;  %s10393_s9 = scalar_lea.hbm %s11968_s6, 512 }
 0xc9d   : > { %p10390_p4 = scmp.ne.s32.totalorder %s11920_s19, %s10389_s17  ;;  %p10394_p9 = scmp.lt.u32.totalorder %s11920_s19, %s11968_s6 }
 0xc9e   : > { %p10395_p10 = scmp.lt.u32.totalorder %s10393_s9, %s10389_s17  ;;  %p10397_p12 = scmp.lt.u32.totalorder %s10389_s17, %s11920_s19 }
 0xc9f   : > { %p10391_p7 = pnand %p10390_p4, %p10517_p5 }
 0xca0   : > { %p10396_p11 = por %p10395_p10, %p10394_p9 }
 0xca1   : > { %p10392_p8 = pneg %p10391_p7 }
 0xca2   : > { %p10398_p13 = por %p10397_p12, %p10396_p11 }
 0xca4   : > { %p10399_p0 = pnand %p10398_p13, %p10392_p8 }
 0xca6   : > { %10402 = shalt.err (!%p10399_p0)
}
 0xca7   : > { %10326 = dma.vmem_to_hbm [thread:$0]  (%p10517_p5), %s11922_s13, 256, %s11920_s19, %s8520_s25  }
 0xca8 PF: > { %p10332_p1 = scmp.ge.s32.totalorder %s10437_s24, 2  ;;  %s8546_s12 = sand.u32 1, %s10425_s21  }
 0xca9   : > { %s8547_s14 = scalar_lea.sflag [#allocation3], %s8546_s12 }
 0xcaa   : > { %p10329_p2 = pnand %p10332_p1, %p10521_p6 }
 0xcac   : > { %10420 = dma.done.wait (!%p10329_p2), %s8547_s14, 256  }
 0xcad   : > { %10422 = vsyncadd (!%p10329_p2), %s8547_s14, 4294967040  ;;  %p16_p3 = scmp.ge.s32.totalorder %s10504_s27, 4   ;;  %s12370_s21 = smov %s10429_s22 }
 0xcae   : > { %s12371_s22 = smov %s10433_s23  ;;  %s12372_s23 = smov %s10515_s30 }
 0xcaf   : > { %s12373_s24 = smov %s10504_s27  ;;  %18 = sbr.rel (!%p16_p3) target bundleno = 3 (0x3), region = 83 }
 0xcb6   :  { %8552 = vsyncpa [#allocation3], 1 }
 0xcb7   :  { %8554 = vsyncpa [#allocation3 + $0x1], 1 }

</bundles_post_ra>
